<compile_context>
chip_gen: v7x
topology: tpu7x:2x2x1
jax: 0.10.0
libtpu: 0.0.40
codegen_flags: <defaults>
</compile_context>

<pallas_src>
import jax
import jax.numpy as jnp
from jax import lax
from jax.experimental import pallas as pl
from jax.experimental.pallas import tpu as pltpu


# ----------------------------------------------------------------------------
# Fused Pallas kernel (layer0 fwd+bwd, layer1 fwd+bwd, FC — one pallas_call)
# ----------------------------------------------------------------------------
def _make_fused_kernel(T: int, B: int, Bp: int, D: int, H: int, K: int):
    H2, H4, H6, H8 = 2 * H, 4 * H, 6 * H, 8 * H
    f32, bf16 = jnp.float32, jnp.bfloat16

    def kernel(x_ref, wA0_ref, wB0_ref, b0_ref, whh0_ref,
               wA1_ref, wB1_ref, b1_ref, whh1_ref, fcw_ref, fcb_ref,
               out_ref, xpad_ref, xpA_ref, xpB_ref, out0_ref):
        # x_ref:          (B, T, D)   raw batch-first input (no wrapper-side transforms)
        # wA*/wB*:        (Din, 8H)   gate-major input weights; A = fwd lanes (+0 bwd),
        #                             B = bwd lanes (+0 fwd)   [i_f i_b|f_f f_b|g_f g_b|o_f o_b]
        # b*:             (1, 8H)     pre-summed b_ih+b_hh, gate-major (both directions)
        # whh*:           (2H, 8H)    rows 0:H = h_fwd weights (fwd lanes), rows H:2H = h_bwd
        # fcw: (2H, K), fcb: (1, K);  out_ref: (B, K)
        # scratch: xpad (T*Bp, D) f32, xpA/xpB (T*Bp, 8H) f32, out0 (T*Bp, 2H) f32

        # ---- in-kernel time-major re-layout + batch pad to a full sublane tile ----
        xpad_ref[...] = jnp.zeros_like(xpad_ref)
        for t in range(T):                       # one-time, off the recurrent critical path
            xpad_ref[t * Bp:t * Bp + B, :] = x_ref[:, t, :]

        def bi_lstm_layer(xin_bf16, wA_ref, wB_ref, b_ref, whh_ref, store_out):
            # Hoisted input projections over all T timesteps (one MXU pass per direction).
            # xpA carries the full bias (both directions); xpB is bwd-lane weights only, so
            # g_cat = xpA[t_fwd] + xpB[t_bwd] + h@Whh is exact for both directions.
            xpA_ref[...] = (jnp.dot(xin_bf16, wA_ref[...],
                                    preferred_element_type=f32) + b_ref[...])
            xpB_ref[...] = jnp.dot(xin_bf16, wB_ref[...], preferred_element_type=f32)

            whh = whh_ref[...]                   # weight-stationary: read once per layer
            h = jnp.zeros((Bp, H2), f32)         # [h_fwd | h_bwd]
            c = jnp.zeros((Bp, H2), f32)         # [c_fwd | c_bwd]
            h_first = None
            for s in range(T):                   # fully unrolled: fwd eats time s, bwd T-1-s
                tf, tb = s, T - 1 - s
                rec = jnp.dot(h.astype(bf16), whh, preferred_element_type=f32)  # (Bp, 8H)
                g_cat = (xpA_ref[tf * Bp:(tf + 1) * Bp, :]
                         + xpB_ref[tb * Bp:(tb + 1) * Bp, :] + rec)
                # Full-vreg activations: 1 sigmoid over (Bp,8H), 1 tanh over the g block,
                # 1 tanh over the (Bp,2H) cell state -> 4 EUP ops per step total.
                sig = jax.nn.sigmoid(g_cat)                 # i|f|.|o lanes (g lanes unused)
                g_act = jnp.tanh(g_cat[:, H4:H6])           # cell candidate, both directions
                c = sig[:, H2:H4] * c + sig[:, 0:H2] * g_act
                h = sig[:, H6:H8] * jnp.tanh(c)             # [h_f(tf) | h_b(tb)]
                if store_out:                    # layer-0 sequence stays in VMEM scratch
                    out0_ref[tf * Bp:(tf + 1) * Bp, 0:H] = h[:, 0:H]
                    out0_ref[tb * Bp:(tb + 1) * Bp, H:H2] = h[:, H:H2]
                if s == 0:
                    h_first = h                  # bwd half is h_bwd at time T-1
            return h_first, h                    # (h at step 0, h at step T-1)

        # ---- Layer 0: writes its full output sequence into VMEM scratch ----
        bi_lstm_layer(xpad_ref[...].astype(bf16), wA0_ref, wB0_ref, b0_ref, whh0_ref, True)

        # ---- Layer 1: only the last timestep is needed downstream ----
        h0, hT = bi_lstm_layer(out0_ref[...].astype(bf16), wA1_ref, wB1_ref, b1_ref,
                               whh1_ref, False)

        # rnn_out[:, -1, :] == [h_fwd_l1(T-1) | h_bwd_l1(T-1)]
        last = jnp.concatenate([hT[:, 0:H], h0[:, H:H2]], axis=1)           # (Bp, 2H)

        # ---- FC fused into the same kernel; only rows 0:B leave the chip ----
        res = (jnp.dot(last.astype(bf16), fcw_ref[...],
                       preferred_element_type=f32) + fcb_ref[...])          # (Bp, K)
        out_ref[...] = res[0:B, :]

    return kernel


# ----------------------------------------------------------------------------
# Parameter packing (done ONCE, outside the hot path) — gate-major + bf16
# ----------------------------------------------------------------------------
def pack_params(params, hidden_dim):
    """Repack PyTorch-layout LSTM/Linear params: gate-major columns, pre-transposed,
    biases pre-summed, matmul operands cast to bf16 (accumulation stays f32 in-kernel)."""
    H = hidden_dim
    f32, bf16 = jnp.float32, jnp.bfloat16

    def ih_pair(w_f, w_b):
        # (4H, Din) each -> two (Din, 8H): A holds fwd weights at fwd lanes (0 elsewhere),
        # B holds bwd weights at bwd lanes. Gate-major blocks [i | f | g | o], each 2H wide.
        w_f = jnp.asarray(w_f, f32); w_b = jnp.asarray(w_b, f32)
        din = w_f.shape[1]
        A = jnp.zeros((din, 8 * H), f32)
        Bm = jnp.zeros((din, 8 * H), f32)
        for g in range(4):
            A = A.at[:, g * 2 * H:g * 2 * H + H].set(w_f[g * H:(g + 1) * H, :].T)
            Bm = Bm.at[:, g * 2 * H + H:(g + 1) * 2 * H].set(w_b[g * H:(g + 1) * H, :].T)
        return A.astype(bf16), Bm.astype(bf16)

    def hh_pair(w_f, w_b):
        # (4H, H) each -> (2H, 8H): rows 0:H (h_fwd) feed fwd lanes, rows H:2H feed bwd lanes.
        w_f = jnp.asarray(w_f, f32); w_b = jnp.asarray(w_b, f32)
        W = jnp.zeros((2 * H, 8 * H), f32)
        for g in range(4):
            W = W.at[0:H, g * 2 * H:g * 2 * H + H].set(w_f[g * H:(g + 1) * H, :].T)
            W = W.at[H:2 * H, g * 2 * H + H:(g + 1) * 2 * H].set(w_b[g * H:(g + 1) * H, :].T)
        return W.astype(bf16)

    def bias_pair(bi_f, bh_f, bi_b, bh_b):
        bf_ = jnp.asarray(bi_f, f32) + jnp.asarray(bh_f, f32)
        bb_ = jnp.asarray(bi_b, f32) + jnp.asarray(bh_b, f32)
        out = jnp.zeros((8 * H,), f32)
        for g in range(4):
            out = out.at[g * 2 * H:g * 2 * H + H].set(bf_[g * H:(g + 1) * H])
            out = out.at[g * 2 * H + H:(g + 1) * 2 * H].set(bb_[g * H:(g + 1) * H])
        return out.reshape(1, 8 * H)

    wA0, wB0 = ih_pair(params["w_ih_l0"], params["w_ih_l0r"])
    wA1, wB1 = ih_pair(params["w_ih_l1"], params["w_ih_l1r"])
    return {
        "wA0": wA0, "wB0": wB0,
        "whh0": hh_pair(params["w_hh_l0"], params["w_hh_l0r"]),
        "b0": bias_pair(params["b_ih_l0"], params["b_hh_l0"],
                        params["b_ih_l0r"], params["b_hh_l0r"]),
        "wA1": wA1, "wB1": wB1,
        "whh1": hh_pair(params["w_hh_l1"], params["w_hh_l1r"]),
        "b1": bias_pair(params["b_ih_l1"], params["b_hh_l1"],
                        params["b_ih_l1r"], params["b_hh_l1r"]),
        "fcw": jnp.asarray(params["fc_w"], f32).T.astype(bf16),   # (2H, K)
        "fcb": jnp.asarray(params["fc_b"], f32).reshape(1, -1),    # (1, K) f32
    }


# ----------------------------------------------------------------------------
# Forward wrapper: single fused pallas_call, no host-side data transforms
# ----------------------------------------------------------------------------
@jax.jit
def kernel_rnn_bi_forward(y, packed):
    """y: (B, T, input_dim) batch-first; packed: output of pack_params -> (B, kernel_size)."""
    B, T, D = y.shape
    H = packed["whh0"].shape[0] // 2
    K = packed["fcw"].shape[1]
    Bp = max(8, ((B + 7) // 8) * 8)      # pad batch to a full f32 sublane tile

    vmem = pl.BlockSpec(memory_space=pltpu.MemorySpace.VMEM)
    return pl.pallas_call(
        _make_fused_kernel(T, B, Bp, D, H, K),
        out_shape=jax.ShapeDtypeStruct((B, K), jnp.float32),
        in_specs=[vmem] * 11,
        out_specs=vmem,
        scratch_shapes=[
            pltpu.VMEM((T * Bp, D), jnp.float32),       # padded time-major input
            pltpu.VMEM((T * Bp, 8 * H), jnp.float32),   # hoisted fwd-lane projection (+bias)
            pltpu.VMEM((T * Bp, 8 * H), jnp.float32),   # hoisted bwd-lane projection
            pltpu.VMEM((T * Bp, 2 * H), jnp.float32),   # layer-0 output sequence
        ],
    )(y.astype(jnp.float32),
      packed["wA0"], packed["wB0"], packed["b0"], packed["whh0"],
      packed["wA1"], packed["wB1"], packed["b1"], packed["whh1"],
      packed["fcw"], packed["fcb"])


# ----------------------------------------------------------------------------
# Pure-JAX f32 reference (for correctness check)
# ----------------------------------------------------------------------------
def _lstm_dir_ref(x_tbd, w_ih, w_hh, b_ih, b_hh, reverse):
    T, B, D = x_tbd.shape
    H = w_hh.shape[1]
    xs = x_tbd[::-1] if reverse else x_tbd

    def step(carry, x_t):
        h, c = carry
        gates = x_t @ w_ih.T + h @ w_hh.T + b_ih + b_hh
        i = jax.nn.sigmoid(gates[:, :H])
        f = jax.nn.sigmoid(gates[:, H:2 * H])
        g = jnp.tanh(gates[:, 2 * H:3 * H])
        o = jax.nn.sigmoid(gates[:, 3 * H:])
        c = f * c + i * g
        h = o * jnp.tanh(c)
        return (h, c), h

    (_, _), hs = lax.scan(step, (jnp.zeros((B, H)), jnp.zeros((B, H))), xs)
    return hs[::-1] if reverse else hs


def _forward_ref(y, params):
    x = jnp.transpose(y, (1, 0, 2)).astype(jnp.float32)
    f0 = _lstm_dir_ref(x, params["w_ih_l0"], params["w_hh_l0"], params["b_ih_l0"], params["b_hh_l0"], False)
    b0 = _lstm_dir_ref(x, params["w_ih_l0r"], params["w_hh_l0r"], params["b_ih_l0r"], params["b_hh_l0r"], True)
    o0 = jnp.concatenate([f0, b0], axis=-1)
    f1 = _lstm_dir_ref(o0, params["w_ih_l1"], params["w_hh_l1"], params["b_ih_l1"], params["b_hh_l1"], False)
    b1 = _lstm_dir_ref(o0, params["w_ih_l1r"], params["w_hh_l1r"], params["b_ih_l1r"], params["b_hh_l1r"], True)
    o1 = jnp.concatenate([f1, b1], axis=-1)
    last = o1[-1]
    return last @ params["fc_w"].T + params["fc_b"]


# ----------------------------------------------------------------------------
# Deterministic parameter construction (mirrors nn.LSTM / nn.Linear shapes)
# ----------------------------------------------------------------------------
def init_params(key, input_dim, hidden_dim, kernel_size):
    H = hidden_dim
    bound = 1.0 / jnp.sqrt(H)
    names_shapes = [
        ("w_ih_l0", (4 * H, input_dim)), ("w_hh_l0", (4 * H, H)),
        ("b_ih_l0", (4 * H,)), ("b_hh_l0", (4 * H,)),
        ("w_ih_l0r", (4 * H, input_dim)), ("w_hh_l0r", (4 * H, H)),
        ("b_ih_l0r", (4 * H,)), ("b_hh_l0r", (4 * H,)),
        ("w_ih_l1", (4 * H, 2 * H)), ("w_hh_l1", (4 * H, H)),
        ("b_ih_l1", (4 * H,)), ("b_hh_l1", (4 * H,)),
        ("w_ih_l1r", (4 * H, 2 * H)), ("w_hh_l1r", (4 * H, H)),
        ("b_ih_l1r", (4 * H,)), ("b_hh_l1r", (4 * H,)),
        ("fc_w", (kernel_size, 2 * H)), ("fc_b", (kernel_size,)),
    ]
    params = {}
    keys = jax.random.split(key, len(names_shapes))
    for k, (name, shape) in zip(keys, names_shapes):
        params[name] = jax.random.uniform(k, shape, jnp.float32, minval=-bound, maxval=bound)
    return params


# ----------------------------------------------------------------------------
if __name__ == "__main__":
    input_dim = 16
    hidden_dim = 32
    kernel_size = 8
    batch = 2
    seq = 8

    root = jax.random.PRNGKey(0)
    k_param, k_data = jax.random.split(root)
    params = init_params(k_param, input_dim, hidden_dim, kernel_size)
    y = jax.random.normal(k_data, (batch, seq, input_dim), jnp.float32)

    packed = pack_params(params, hidden_dim)      # one-time packing, outside the hot path
    out = kernel_rnn_bi_forward(y, packed)
    out = jax.block_until_ready(out)

    ref = _forward_ref(y, params)
    assert out.shape == (batch, kernel_size), out.shape
    # Tolerance loosened vs. the all-f32 variant because matmul operands run on the native
    # bf16 MXU path (f32 accumulation); structural bugs would show O(0.1-1) errors.
    err = float(jnp.max(jnp.abs(out - ref)))
    assert jnp.allclose(out, ref, atol=3e-2, rtol=3e-2), (err, out, ref)

    print("KERNEL_OK")
</pallas_src>

<mosaic_0001>
module attributes {stable_mosaic.version = 11 : i64} {
  func.func @kernel(%arg0: memref<2x8x16xf32, #tpu.memory_space<vmem>>, %arg1: memref<16x256xbf16, #tpu.memory_space<vmem>>, %arg2: memref<16x256xbf16, #tpu.memory_space<vmem>>, %arg3: memref<1x256xf32, #tpu.memory_space<vmem>>, %arg4: memref<64x256xbf16, #tpu.memory_space<vmem>>, %arg5: memref<64x256xbf16, #tpu.memory_space<vmem>>, %arg6: memref<64x256xbf16, #tpu.memory_space<vmem>>, %arg7: memref<1x256xf32, #tpu.memory_space<vmem>>, %arg8: memref<64x256xbf16, #tpu.memory_space<vmem>>, %arg9: memref<64x8xbf16, #tpu.memory_space<vmem>>, %arg10: memref<1x8xf32, #tpu.memory_space<vmem>>, %arg11: memref<2x8xf32, #tpu.memory_space<vmem>>, %arg12: memref<64x16xf32, #tpu.memory_space<vmem>>, %arg13: memref<64x256xf32, #tpu.memory_space<vmem>>, %arg14: memref<64x256xf32, #tpu.memory_space<vmem>>, %arg15: memref<64x64xf32, #tpu.memory_space<vmem>>) attributes {dimension_semantics = [], scalar_prefetch = 0 : i64, scratch_operands = 4 : i64, tpu.core_type = #tpu.core_type<tc>} {
    %cst = arith.constant 0.000000e+00 : f32
    %0 = vector.broadcast %cst : f32 to vector<64x16xf32>
    %c0 = arith.constant 0 : index
    %c0_0 = arith.constant 0 : index
    %1 = vector.load %arg12[%c0, %c0_0] : memref<64x16xf32, #tpu.memory_space<vmem>>, vector<64x16xf32>
    tpu.vector_store %arg12[%c0, %c0_0], %0 {strides = array<i32>} : memref<64x16xf32, #tpu.memory_space<vmem>>, vector<64x16xf32>,
    %c0_1 = arith.constant 0 : index
    %c0_2 = arith.constant 0 : index
    %c0_3 = arith.constant 0 : index
    %2 = vector.load %arg0[%c0_1, %c0_2, %c0_3] : memref<2x8x16xf32, #tpu.memory_space<vmem>>, vector<2x1x16xf32>
    %3 = vector.shape_cast %2 : vector<2x1x16xf32> to vector<2x16xf32>
    %c0_4 = arith.constant 0 : index
    %c0_5 = arith.constant 0 : index
    %4 = vector.load %arg12[%c0_4, %c0_5] : memref<64x16xf32, #tpu.memory_space<vmem>>, vector<2x16xf32>
    tpu.vector_store %arg12[%c0_4, %c0_5], %3 {strides = array<i32>} : memref<64x16xf32, #tpu.memory_space<vmem>>, vector<2x16xf32>,
    %c0_6 = arith.constant 0 : index
    %c1 = arith.constant 1 : index
    %c0_7 = arith.constant 0 : index
    %5 = vector.load %arg0[%c0_6, %c1, %c0_7] : memref<2x8x16xf32, #tpu.memory_space<vmem>>, vector<2x1x16xf32>
    %6 = vector.shape_cast %5 : vector<2x1x16xf32> to vector<2x16xf32>
    %c8 = arith.constant 8 : index
    %c0_8 = arith.constant 0 : index
    %7 = vector.load %arg12[%c8, %c0_8] : memref<64x16xf32, #tpu.memory_space<vmem>>, vector<2x16xf32>
    tpu.vector_store %arg12[%c8, %c0_8], %6 {strides = array<i32>} : memref<64x16xf32, #tpu.memory_space<vmem>>, vector<2x16xf32>,
    %c0_9 = arith.constant 0 : index
    %c2 = arith.constant 2 : index
    %c0_10 = arith.constant 0 : index
    %8 = vector.load %arg0[%c0_9, %c2, %c0_10] : memref<2x8x16xf32, #tpu.memory_space<vmem>>, vector<2x1x16xf32>
    %9 = vector.shape_cast %8 : vector<2x1x16xf32> to vector<2x16xf32>
    %c16 = arith.constant 16 : index
    %c0_11 = arith.constant 0 : index
    %10 = vector.load %arg12[%c16, %c0_11] : memref<64x16xf32, #tpu.memory_space<vmem>>, vector<2x16xf32>
    tpu.vector_store %arg12[%c16, %c0_11], %9 {strides = array<i32>} : memref<64x16xf32, #tpu.memory_space<vmem>>, vector<2x16xf32>,
    %c0_12 = arith.constant 0 : index
    %c3 = arith.constant 3 : index
    %c0_13 = arith.constant 0 : index
    %11 = vector.load %arg0[%c0_12, %c3, %c0_13] : memref<2x8x16xf32, #tpu.memory_space<vmem>>, vector<2x1x16xf32>
    %12 = vector.shape_cast %11 : vector<2x1x16xf32> to vector<2x16xf32>
    %c24 = arith.constant 24 : index
    %c0_14 = arith.constant 0 : index
    %13 = vector.load %arg12[%c24, %c0_14] : memref<64x16xf32, #tpu.memory_space<vmem>>, vector<2x16xf32>
    tpu.vector_store %arg12[%c24, %c0_14], %12 {strides = array<i32>} : memref<64x16xf32, #tpu.memory_space<vmem>>, vector<2x16xf32>,
    %c0_15 = arith.constant 0 : index
    %c4 = arith.constant 4 : index
    %c0_16 = arith.constant 0 : index
    %14 = vector.load %arg0[%c0_15, %c4, %c0_16] : memref<2x8x16xf32, #tpu.memory_space<vmem>>, vector<2x1x16xf32>
    %15 = vector.shape_cast %14 : vector<2x1x16xf32> to vector<2x16xf32>
    %c32 = arith.constant 32 : index
    %c0_17 = arith.constant 0 : index
    %16 = vector.load %arg12[%c32, %c0_17] : memref<64x16xf32, #tpu.memory_space<vmem>>, vector<2x16xf32>
    tpu.vector_store %arg12[%c32, %c0_17], %15 {strides = array<i32>} : memref<64x16xf32, #tpu.memory_space<vmem>>, vector<2x16xf32>,
    %c0_18 = arith.constant 0 : index
    %c5 = arith.constant 5 : index
    %c0_19 = arith.constant 0 : index
    %17 = vector.load %arg0[%c0_18, %c5, %c0_19] : memref<2x8x16xf32, #tpu.memory_space<vmem>>, vector<2x1x16xf32>
    %18 = vector.shape_cast %17 : vector<2x1x16xf32> to vector<2x16xf32>
    %c40 = arith.constant 40 : index
    %c0_20 = arith.constant 0 : index
    %19 = vector.load %arg12[%c40, %c0_20] : memref<64x16xf32, #tpu.memory_space<vmem>>, vector<2x16xf32>
    tpu.vector_store %arg12[%c40, %c0_20], %18 {strides = array<i32>} : memref<64x16xf32, #tpu.memory_space<vmem>>, vector<2x16xf32>,
    %c0_21 = arith.constant 0 : index
    %c6 = arith.constant 6 : index
    %c0_22 = arith.constant 0 : index
    %20 = vector.load %arg0[%c0_21, %c6, %c0_22] : memref<2x8x16xf32, #tpu.memory_space<vmem>>, vector<2x1x16xf32>
    %21 = vector.shape_cast %20 : vector<2x1x16xf32> to vector<2x16xf32>
    %c48 = arith.constant 48 : index
    %c0_23 = arith.constant 0 : index
    %22 = vector.load %arg12[%c48, %c0_23] : memref<64x16xf32, #tpu.memory_space<vmem>>, vector<2x16xf32>
    tpu.vector_store %arg12[%c48, %c0_23], %21 {strides = array<i32>} : memref<64x16xf32, #tpu.memory_space<vmem>>, vector<2x16xf32>,
    %c0_24 = arith.constant 0 : index
    %c7 = arith.constant 7 : index
    %c0_25 = arith.constant 0 : index
    %23 = vector.load %arg0[%c0_24, %c7, %c0_25] : memref<2x8x16xf32, #tpu.memory_space<vmem>>, vector<2x1x16xf32>
    %24 = vector.shape_cast %23 : vector<2x1x16xf32> to vector<2x16xf32>
    %c56 = arith.constant 56 : index
    %c0_26 = arith.constant 0 : index
    %25 = vector.load %arg12[%c56, %c0_26] : memref<64x16xf32, #tpu.memory_space<vmem>>, vector<2x16xf32>
    tpu.vector_store %arg12[%c56, %c0_26], %24 {strides = array<i32>} : memref<64x16xf32, #tpu.memory_space<vmem>>, vector<2x16xf32>,
    %c0_27 = arith.constant 0 : index
    %c0_28 = arith.constant 0 : index
    %26 = vector.load %arg12[%c0_27, %c0_28] : memref<64x16xf32, #tpu.memory_space<vmem>>, vector<64x16xf32>
    %27 = arith.truncf %26 : vector<64x16xf32> to vector<64x16xbf16>
    %c0_29 = arith.constant 0 : index
    %c0_30 = arith.constant 0 : index
    %28 = vector.load %arg1[%c0_29, %c0_30] : memref<16x256xbf16, #tpu.memory_space<vmem>>, vector<16x256xbf16>
    %cst_31 = arith.constant dense<0.000000e+00> : vector<64x256xf32>
    %29 = tpu.matmul %27, %28, %cst_31 {dimension_numbers = #tpu.dot_dimension_numbers<[1], [0], [0], [1], [0, 0, 1, 1], [], []>} : vector<64x16xbf16>, vector<16x256xbf16>, vector<64x256xf32> -> vector<64x256xf32>
    %c0_32 = arith.constant 0 : index
    %c0_33 = arith.constant 0 : index
    %30 = vector.load %arg3[%c0_32, %c0_33] : memref<1x256xf32, #tpu.memory_space<vmem>>, vector<1x256xf32>
    %31 = vector.broadcast %30 : vector<1x256xf32> to vector<64x256xf32>
    %32 = arith.addf %29, %31 : vector<64x256xf32>
    %c0_34 = arith.constant 0 : index
    %c0_35 = arith.constant 0 : index
    %33 = vector.load %arg13[%c0_34, %c0_35] : memref<64x256xf32, #tpu.memory_space<vmem>>, vector<64x256xf32>
    tpu.vector_store %arg13[%c0_34, %c0_35], %32 {strides = array<i32>} : memref<64x256xf32, #tpu.memory_space<vmem>>, vector<64x256xf32>,
    %c0_36 = arith.constant 0 : index
    %c0_37 = arith.constant 0 : index
    %34 = vector.load %arg2[%c0_36, %c0_37] : memref<16x256xbf16, #tpu.memory_space<vmem>>, vector<16x256xbf16>
    %cst_38 = arith.constant dense<0.000000e+00> : vector<64x256xf32>
    %35 = tpu.matmul %27, %34, %cst_38 {dimension_numbers = #tpu.dot_dimension_numbers<[1], [0], [0], [1], [0, 0, 1, 1], [], []>} : vector<64x16xbf16>, vector<16x256xbf16>, vector<64x256xf32> -> vector<64x256xf32>
    %c0_39 = arith.constant 0 : index
    %c0_40 = arith.constant 0 : index
    %36 = vector.load %arg14[%c0_39, %c0_40] : memref<64x256xf32, #tpu.memory_space<vmem>>, vector<64x256xf32>
    tpu.vector_store %arg14[%c0_39, %c0_40], %35 {strides = array<i32>} : memref<64x256xf32, #tpu.memory_space<vmem>>, vector<64x256xf32>,
    %c0_41 = arith.constant 0 : index
    %c0_42 = arith.constant 0 : index
    %37 = vector.load %arg4[%c0_41, %c0_42] : memref<64x256xbf16, #tpu.memory_space<vmem>>, vector<64x256xbf16>
    %cst_43 = arith.constant 0.000000e+00 : f32
    %38 = vector.broadcast %cst_43 : f32 to vector<8x64xf32>
    %cst_44 = arith.constant 0.000000e+00 : f32
    %39 = vector.broadcast %cst_44 : f32 to vector<8x64xf32>
    %40 = arith.truncf %38 : vector<8x64xf32> to vector<8x64xbf16>
    %cst_45 = arith.constant dense<0.000000e+00> : vector<8x256xf32>
    %41 = tpu.matmul %40, %37, %cst_45 {dimension_numbers = #tpu.dot_dimension_numbers<[1], [0], [0], [1], [0, 0, 1, 1], [], []>} : vector<8x64xbf16>, vector<64x256xbf16>, vector<8x256xf32> -> vector<8x256xf32>
    %c0_46 = arith.constant 0 : index
    %c0_47 = arith.constant 0 : index
    %42 = vector.load %arg13[%c0_46, %c0_47] : memref<64x256xf32, #tpu.memory_space<vmem>>, vector<8x256xf32>
    %c56_48 = arith.constant 56 : index
    %c0_49 = arith.constant 0 : index
    %43 = vector.load %arg14[%c56_48, %c0_49] : memref<64x256xf32, #tpu.memory_space<vmem>>, vector<8x256xf32>
    %44 = arith.addf %42, %43 : vector<8x256xf32>
    %45 = arith.addf %44, %41 : vector<8x256xf32>
    %46 = arith.negf %45 : vector<8x256xf32>
    %47 = math.exp %46 : vector<8x256xf32>
    %cst_50 = arith.constant 1.000000e+00 : f32
    %48 = vector.broadcast %cst_50 : f32 to vector<8x256xf32>
    %49 = arith.addf %48, %47 : vector<8x256xf32>
    %50 = arith.divf %48, %49 : vector<8x256xf32>
    %51 = vector.extract_strided_slice %45 {offsets = [0, 128], sizes = [8, 64], strides = [1, 1]} : vector<8x256xf32> to vector<8x64xf32>
    %52 = math.tanh %51 : vector<8x64xf32>
    %53 = vector.extract_strided_slice %50 {offsets = [0, 64], sizes = [8, 64], strides = [1, 1]} : vector<8x256xf32> to vector<8x64xf32>
    %54 = arith.mulf %53, %39 : vector<8x64xf32>
    %55 = vector.extract_strided_slice %50 {offsets = [0, 0], sizes = [8, 64], strides = [1, 1]} : vector<8x256xf32> to vector<8x64xf32>
    %56 = arith.mulf %55, %52 : vector<8x64xf32>
    %57 = arith.addf %54, %56 : vector<8x64xf32>
    %58 = vector.extract_strided_slice %50 {offsets = [0, 192], sizes = [8, 64], strides = [1, 1]} : vector<8x256xf32> to vector<8x64xf32>
    %59 = math.tanh %57 : vector<8x64xf32>
    %60 = arith.mulf %58, %59 : vector<8x64xf32>
    %61 = vector.extract_strided_slice %60 {offsets = [0, 0], sizes = [8, 32], strides = [1, 1]} : vector<8x64xf32> to vector<8x32xf32>
    %c0_51 = arith.constant 0 : index
    %c0_52 = arith.constant 0 : index
    %62 = vector.load %arg15[%c0_51, %c0_52] : memref<64x64xf32, #tpu.memory_space<vmem>>, vector<8x32xf32>
    tpu.vector_store %arg15[%c0_51, %c0_52], %61 {strides = array<i32>} : memref<64x64xf32, #tpu.memory_space<vmem>>, vector<8x32xf32>,
    %63 = vector.extract_strided_slice %60 {offsets = [0, 32], sizes = [8, 32], strides = [1, 1]} : vector<8x64xf32> to vector<8x32xf32>
    %c56_53 = arith.constant 56 : index
    %c32_54 = arith.constant 32 : index
    %64 = vector.load %arg15[%c56_53, %c32_54] : memref<64x64xf32, #tpu.memory_space<vmem>>, vector<8x32xf32>
    tpu.vector_store %arg15[%c56_53, %c32_54], %63 {strides = array<i32>} : memref<64x64xf32, #tpu.memory_space<vmem>>, vector<8x32xf32>,
    %65 = arith.truncf %60 : vector<8x64xf32> to vector<8x64xbf16>
    %cst_55 = arith.constant dense<0.000000e+00> : vector<8x256xf32>
    %66 = tpu.matmul %65, %37, %cst_55 {dimension_numbers = #tpu.dot_dimension_numbers<[1], [0], [0], [1], [0, 0, 1, 1], [], []>} : vector<8x64xbf16>, vector<64x256xbf16>, vector<8x256xf32> -> vector<8x256xf32>
    %c8_56 = arith.constant 8 : index
    %c0_57 = arith.constant 0 : index
    %67 = vector.load %arg13[%c8_56, %c0_57] : memref<64x256xf32, #tpu.memory_space<vmem>>, vector<8x256xf32>
    %c48_58 = arith.constant 48 : index
    %c0_59 = arith.constant 0 : index
    %68 = vector.load %arg14[%c48_58, %c0_59] : memref<64x256xf32, #tpu.memory_space<vmem>>, vector<8x256xf32>
    %69 = arith.addf %67, %68 : vector<8x256xf32>
    %70 = arith.addf %69, %66 : vector<8x256xf32>
    %71 = arith.negf %70 : vector<8x256xf32>
    %72 = math.exp %71 : vector<8x256xf32>
    %cst_60 = arith.constant 1.000000e+00 : f32
    %73 = vector.broadcast %cst_60 : f32 to vector<8x256xf32>
    %74 = arith.addf %73, %72 : vector<8x256xf32>
    %75 = arith.divf %73, %74 : vector<8x256xf32>
    %76 = vector.extract_strided_slice %70 {offsets = [0, 128], sizes = [8, 64], strides = [1, 1]} : vector<8x256xf32> to vector<8x64xf32>
    %77 = math.tanh %76 : vector<8x64xf32>
    %78 = vector.extract_strided_slice %75 {offsets = [0, 64], sizes = [8, 64], strides = [1, 1]} : vector<8x256xf32> to vector<8x64xf32>
    %79 = arith.mulf %78, %57 : vector<8x64xf32>
    %80 = vector.extract_strided_slice %75 {offsets = [0, 0], sizes = [8, 64], strides = [1, 1]} : vector<8x256xf32> to vector<8x64xf32>
    %81 = arith.mulf %80, %77 : vector<8x64xf32>
    %82 = arith.addf %79, %81 : vector<8x64xf32>
    %83 = vector.extract_strided_slice %75 {offsets = [0, 192], sizes = [8, 64], strides = [1, 1]} : vector<8x256xf32> to vector<8x64xf32>
    %84 = math.tanh %82 : vector<8x64xf32>
    %85 = arith.mulf %83, %84 : vector<8x64xf32>
    %86 = vector.extract_strided_slice %85 {offsets = [0, 0], sizes = [8, 32], strides = [1, 1]} : vector<8x64xf32> to vector<8x32xf32>
    %c8_61 = arith.constant 8 : index
    %c0_62 = arith.constant 0 : index
    %87 = vector.load %arg15[%c8_61, %c0_62] : memref<64x64xf32, #tpu.memory_space<vmem>>, vector<8x32xf32>
    tpu.vector_store %arg15[%c8_61, %c0_62], %86 {strides = array<i32>} : memref<64x64xf32, #tpu.memory_space<vmem>>, vector<8x32xf32>,
    %88 = vector.extract_strided_slice %85 {offsets = [0, 32], sizes = [8, 32], strides = [1, 1]} : vector<8x64xf32> to vector<8x32xf32>
    %c48_63 = arith.constant 48 : index
    %c32_64 = arith.constant 32 : index
    %89 = vector.load %arg15[%c48_63, %c32_64] : memref<64x64xf32, #tpu.memory_space<vmem>>, vector<8x32xf32>
    tpu.vector_store %arg15[%c48_63, %c32_64], %88 {strides = array<i32>} : memref<64x64xf32, #tpu.memory_space<vmem>>, vector<8x32xf32>,
    %90 = arith.truncf %85 : vector<8x64xf32> to vector<8x64xbf16>
    %cst_65 = arith.constant dense<0.000000e+00> : vector<8x256xf32>
    %91 = tpu.matmul %90, %37, %cst_65 {dimension_numbers = #tpu.dot_dimension_numbers<[1], [0], [0], [1], [0, 0, 1, 1], [], []>} : vector<8x64xbf16>, vector<64x256xbf16>, vector<8x256xf32> -> vector<8x256xf32>
    %c16_66 = arith.constant 16 : index
    %c0_67 = arith.constant 0 : index
    %92 = vector.load %arg13[%c16_66, %c0_67] : memref<64x256xf32, #tpu.memory_space<vmem>>, vector<8x256xf32>
    %c40_68 = arith.constant 40 : index
    %c0_69 = arith.constant 0 : index
    %93 = vector.load %arg14[%c40_68, %c0_69] : memref<64x256xf32, #tpu.memory_space<vmem>>, vector<8x256xf32>
    %94 = arith.addf %92, %93 : vector<8x256xf32>
    %95 = arith.addf %94, %91 : vector<8x256xf32>
    %96 = arith.negf %95 : vector<8x256xf32>
    %97 = math.exp %96 : vector<8x256xf32>
    %cst_70 = arith.constant 1.000000e+00 : f32
    %98 = vector.broadcast %cst_70 : f32 to vector<8x256xf32>
    %99 = arith.addf %98, %97 : vector<8x256xf32>
    %100 = arith.divf %98, %99 : vector<8x256xf32>
    %101 = vector.extract_strided_slice %95 {offsets = [0, 128], sizes = [8, 64], strides = [1, 1]} : vector<8x256xf32> to vector<8x64xf32>
    %102 = math.tanh %101 : vector<8x64xf32>
    %103 = vector.extract_strided_slice %100 {offsets = [0, 64], sizes = [8, 64], strides = [1, 1]} : vector<8x256xf32> to vector<8x64xf32>
    %104 = arith.mulf %103, %82 : vector<8x64xf32>
    %105 = vector.extract_strided_slice %100 {offsets = [0, 0], sizes = [8, 64], strides = [1, 1]} : vector<8x256xf32> to vector<8x64xf32>
    %106 = arith.mulf %105, %102 : vector<8x64xf32>
    %107 = arith.addf %104, %106 : vector<8x64xf32>
    %108 = vector.extract_strided_slice %100 {offsets = [0, 192], sizes = [8, 64], strides = [1, 1]} : vector<8x256xf32> to vector<8x64xf32>
    %109 = math.tanh %107 : vector<8x64xf32>
    %110 = arith.mulf %108, %109 : vector<8x64xf32>
    %111 = vector.extract_strided_slice %110 {offsets = [0, 0], sizes = [8, 32], strides = [1, 1]} : vector<8x64xf32> to vector<8x32xf32>
    %c16_71 = arith.constant 16 : index
    %c0_72 = arith.constant 0 : index
    %112 = vector.load %arg15[%c16_71, %c0_72] : memref<64x64xf32, #tpu.memory_space<vmem>>, vector<8x32xf32>
    tpu.vector_store %arg15[%c16_71, %c0_72], %111 {strides = array<i32>} : memref<64x64xf32, #tpu.memory_space<vmem>>, vector<8x32xf32>,
    %113 = vector.extract_strided_slice %110 {offsets = [0, 32], sizes = [8, 32], strides = [1, 1]} : vector<8x64xf32> to vector<8x32xf32>
    %c40_73 = arith.constant 40 : index
    %c32_74 = arith.constant 32 : index
    %114 = vector.load %arg15[%c40_73, %c32_74] : memref<64x64xf32, #tpu.memory_space<vmem>>, vector<8x32xf32>
    tpu.vector_store %arg15[%c40_73, %c32_74], %113 {strides = array<i32>} : memref<64x64xf32, #tpu.memory_space<vmem>>, vector<8x32xf32>,
    %115 = arith.truncf %110 : vector<8x64xf32> to vector<8x64xbf16>
    %cst_75 = arith.constant dense<0.000000e+00> : vector<8x256xf32>
    %116 = tpu.matmul %115, %37, %cst_75 {dimension_numbers = #tpu.dot_dimension_numbers<[1], [0], [0], [1], [0, 0, 1, 1], [], []>} : vector<8x64xbf16>, vector<64x256xbf16>, vector<8x256xf32> -> vector<8x256xf32>
    %c24_76 = arith.constant 24 : index
    %c0_77 = arith.constant 0 : index
    %117 = vector.load %arg13[%c24_76, %c0_77] : memref<64x256xf32, #tpu.memory_space<vmem>>, vector<8x256xf32>
    %c32_78 = arith.constant 32 : index
    %c0_79 = arith.constant 0 : index
    %118 = vector.load %arg14[%c32_78, %c0_79] : memref<64x256xf32, #tpu.memory_space<vmem>>, vector<8x256xf32>
    %119 = arith.addf %117, %118 : vector<8x256xf32>
    %120 = arith.addf %119, %116 : vector<8x256xf32>
    %121 = arith.negf %120 : vector<8x256xf32>
    %122 = math.exp %121 : vector<8x256xf32>
    %cst_80 = arith.constant 1.000000e+00 : f32
    %123 = vector.broadcast %cst_80 : f32 to vector<8x256xf32>
    %124 = arith.addf %123, %122 : vector<8x256xf32>
    %125 = arith.divf %123, %124 : vector<8x256xf32>
    %126 = vector.extract_strided_slice %120 {offsets = [0, 128], sizes = [8, 64], strides = [1, 1]} : vector<8x256xf32> to vector<8x64xf32>
    %127 = math.tanh %126 : vector<8x64xf32>
    %128 = vector.extract_strided_slice %125 {offsets = [0, 64], sizes = [8, 64], strides = [1, 1]} : vector<8x256xf32> to vector<8x64xf32>
    %129 = arith.mulf %128, %107 : vector<8x64xf32>
    %130 = vector.extract_strided_slice %125 {offsets = [0, 0], sizes = [8, 64], strides = [1, 1]} : vector<8x256xf32> to vector<8x64xf32>
    %131 = arith.mulf %130, %127 : vector<8x64xf32>
    %132 = arith.addf %129, %131 : vector<8x64xf32>
    %133 = vector.extract_strided_slice %125 {offsets = [0, 192], sizes = [8, 64], strides = [1, 1]} : vector<8x256xf32> to vector<8x64xf32>
    %134 = math.tanh %132 : vector<8x64xf32>
    %135 = arith.mulf %133, %134 : vector<8x64xf32>
    %136 = vector.extract_strided_slice %135 {offsets = [0, 0], sizes = [8, 32], strides = [1, 1]} : vector<8x64xf32> to vector<8x32xf32>
    %c24_81 = arith.constant 24 : index
    %c0_82 = arith.constant 0 : index
    %137 = vector.load %arg15[%c24_81, %c0_82] : memref<64x64xf32, #tpu.memory_space<vmem>>, vector<8x32xf32>
    tpu.vector_store %arg15[%c24_81, %c0_82], %136 {strides = array<i32>} : memref<64x64xf32, #tpu.memory_space<vmem>>, vector<8x32xf32>,
    %138 = vector.extract_strided_slice %135 {offsets = [0, 32], sizes = [8, 32], strides = [1, 1]} : vector<8x64xf32> to vector<8x32xf32>
    %c32_83 = arith.constant 32 : index
    %c32_84 = arith.constant 32 : index
    %139 = vector.load %arg15[%c32_83, %c32_84] : memref<64x64xf32, #tpu.memory_space<vmem>>, vector<8x32xf32>
    tpu.vector_store %arg15[%c32_83, %c32_84], %138 {strides = array<i32>} : memref<64x64xf32, #tpu.memory_space<vmem>>, vector<8x32xf32>,
    %140 = arith.truncf %135 : vector<8x64xf32> to vector<8x64xbf16>
    %cst_85 = arith.constant dense<0.000000e+00> : vector<8x256xf32>
    %141 = tpu.matmul %140, %37, %cst_85 {dimension_numbers = #tpu.dot_dimension_numbers<[1], [0], [0], [1], [0, 0, 1, 1], [], []>} : vector<8x64xbf16>, vector<64x256xbf16>, vector<8x256xf32> -> vector<8x256xf32>
    %c32_86 = arith.constant 32 : index
    %c0_87 = arith.constant 0 : index
    %142 = vector.load %arg13[%c32_86, %c0_87] : memref<64x256xf32, #tpu.memory_space<vmem>>, vector<8x256xf32>
    %c24_88 = arith.constant 24 : index
    %c0_89 = arith.constant 0 : index
    %143 = vector.load %arg14[%c24_88, %c0_89] : memref<64x256xf32, #tpu.memory_space<vmem>>, vector<8x256xf32>
    %144 = arith.addf %142, %143 : vector<8x256xf32>
    %145 = arith.addf %144, %141 : vector<8x256xf32>
    %146 = arith.negf %145 : vector<8x256xf32>
    %147 = math.exp %146 : vector<8x256xf32>
    %cst_90 = arith.constant 1.000000e+00 : f32
    %148 = vector.broadcast %cst_90 : f32 to vector<8x256xf32>
    %149 = arith.addf %148, %147 : vector<8x256xf32>
    %150 = arith.divf %148, %149 : vector<8x256xf32>
    %151 = vector.extract_strided_slice %145 {offsets = [0, 128], sizes = [8, 64], strides = [1, 1]} : vector<8x256xf32> to vector<8x64xf32>
    %152 = math.tanh %151 : vector<8x64xf32>
    %153 = vector.extract_strided_slice %150 {offsets = [0, 64], sizes = [8, 64], strides = [1, 1]} : vector<8x256xf32> to vector<8x64xf32>
    %154 = arith.mulf %153, %132 : vector<8x64xf32>
    %155 = vector.extract_strided_slice %150 {offsets = [0, 0], sizes = [8, 64], strides = [1, 1]} : vector<8x256xf32> to vector<8x64xf32>
    %156 = arith.mulf %155, %152 : vector<8x64xf32>
    %157 = arith.addf %154, %156 : vector<8x64xf32>
    %158 = vector.extract_strided_slice %150 {offsets = [0, 192], sizes = [8, 64], strides = [1, 1]} : vector<8x256xf32> to vector<8x64xf32>
    %159 = math.tanh %157 : vector<8x64xf32>
    %160 = arith.mulf %158, %159 : vector<8x64xf32>
    %161 = vector.extract_strided_slice %160 {offsets = [0, 0], sizes = [8, 32], strides = [1, 1]} : vector<8x64xf32> to vector<8x32xf32>
    %c32_91 = arith.constant 32 : index
    %c0_92 = arith.constant 0 : index
    %162 = vector.load %arg15[%c32_91, %c0_92] : memref<64x64xf32, #tpu.memory_space<vmem>>, vector<8x32xf32>
    tpu.vector_store %arg15[%c32_91, %c0_92], %161 {strides = array<i32>} : memref<64x64xf32, #tpu.memory_space<vmem>>, vector<8x32xf32>,
    %163 = vector.extract_strided_slice %160 {offsets = [0, 32], sizes = [8, 32], strides = [1, 1]} : vector<8x64xf32> to vector<8x32xf32>
    %c24_93 = arith.constant 24 : index
    %c32_94 = arith.constant 32 : index
    %164 = vector.load %arg15[%c24_93, %c32_94] : memref<64x64xf32, #tpu.memory_space<vmem>>, vector<8x32xf32>
    tpu.vector_store %arg15[%c24_93, %c32_94], %163 {strides = array<i32>} : memref<64x64xf32, #tpu.memory_space<vmem>>, vector<8x32xf32>,
    %165 = arith.truncf %160 : vector<8x64xf32> to vector<8x64xbf16>
    %cst_95 = arith.constant dense<0.000000e+00> : vector<8x256xf32>
    %166 = tpu.matmul %165, %37, %cst_95 {dimension_numbers = #tpu.dot_dimension_numbers<[1], [0], [0], [1], [0, 0, 1, 1], [], []>} : vector<8x64xbf16>, vector<64x256xbf16>, vector<8x256xf32> -> vector<8x256xf32>
    %c40_96 = arith.constant 40 : index
    %c0_97 = arith.constant 0 : index
    %167 = vector.load %arg13[%c40_96, %c0_97] : memref<64x256xf32, #tpu.memory_space<vmem>>, vector<8x256xf32>
    %c16_98 = arith.constant 16 : index
    %c0_99 = arith.constant 0 : index
    %168 = vector.load %arg14[%c16_98, %c0_99] : memref<64x256xf32, #tpu.memory_space<vmem>>, vector<8x256xf32>
    %169 = arith.addf %167, %168 : vector<8x256xf32>
    %170 = arith.addf %169, %166 : vector<8x256xf32>
    %171 = arith.negf %170 : vector<8x256xf32>
    %172 = math.exp %171 : vector<8x256xf32>
    %cst_100 = arith.constant 1.000000e+00 : f32
    %173 = vector.broadcast %cst_100 : f32 to vector<8x256xf32>
    %174 = arith.addf %173, %172 : vector<8x256xf32>
    %175 = arith.divf %173, %174 : vector<8x256xf32>
    %176 = vector.extract_strided_slice %170 {offsets = [0, 128], sizes = [8, 64], strides = [1, 1]} : vector<8x256xf32> to vector<8x64xf32>
    %177 = math.tanh %176 : vector<8x64xf32>
    %178 = vector.extract_strided_slice %175 {offsets = [0, 64], sizes = [8, 64], strides = [1, 1]} : vector<8x256xf32> to vector<8x64xf32>
    %179 = arith.mulf %178, %157 : vector<8x64xf32>
    %180 = vector.extract_strided_slice %175 {offsets = [0, 0], sizes = [8, 64], strides = [1, 1]} : vector<8x256xf32> to vector<8x64xf32>
    %181 = arith.mulf %180, %177 : vector<8x64xf32>
    %182 = arith.addf %179, %181 : vector<8x64xf32>
    %183 = vector.extract_strided_slice %175 {offsets = [0, 192], sizes = [8, 64], strides = [1, 1]} : vector<8x256xf32> to vector<8x64xf32>
    %184 = math.tanh %182 : vector<8x64xf32>
    %185 = arith.mulf %183, %184 : vector<8x64xf32>
    %186 = vector.extract_strided_slice %185 {offsets = [0, 0], sizes = [8, 32], strides = [1, 1]} : vector<8x64xf32> to vector<8x32xf32>
    %c40_101 = arith.constant 40 : index
    %c0_102 = arith.constant 0 : index
    %187 = vector.load %arg15[%c40_101, %c0_102] : memref<64x64xf32, #tpu.memory_space<vmem>>, vector<8x32xf32>
    tpu.vector_store %arg15[%c40_101, %c0_102], %186 {strides = array<i32>} : memref<64x64xf32, #tpu.memory_space<vmem>>, vector<8x32xf32>,
    %188 = vector.extract_strided_slice %185 {offsets = [0, 32], sizes = [8, 32], strides = [1, 1]} : vector<8x64xf32> to vector<8x32xf32>
    %c16_103 = arith.constant 16 : index
    %c32_104 = arith.constant 32 : index
    %189 = vector.load %arg15[%c16_103, %c32_104] : memref<64x64xf32, #tpu.memory_space<vmem>>, vector<8x32xf32>
    tpu.vector_store %arg15[%c16_103, %c32_104], %188 {strides = array<i32>} : memref<64x64xf32, #tpu.memory_space<vmem>>, vector<8x32xf32>,
    %190 = arith.truncf %185 : vector<8x64xf32> to vector<8x64xbf16>
    %cst_105 = arith.constant dense<0.000000e+00> : vector<8x256xf32>
    %191 = tpu.matmul %190, %37, %cst_105 {dimension_numbers = #tpu.dot_dimension_numbers<[1], [0], [0], [1], [0, 0, 1, 1], [], []>} : vector<8x64xbf16>, vector<64x256xbf16>, vector<8x256xf32> -> vector<8x256xf32>
    %c48_106 = arith.constant 48 : index
    %c0_107 = arith.constant 0 : index
    %192 = vector.load %arg13[%c48_106, %c0_107] : memref<64x256xf32, #tpu.memory_space<vmem>>, vector<8x256xf32>
    %c8_108 = arith.constant 8 : index
    %c0_109 = arith.constant 0 : index
    %193 = vector.load %arg14[%c8_108, %c0_109] : memref<64x256xf32, #tpu.memory_space<vmem>>, vector<8x256xf32>
    %194 = arith.addf %192, %193 : vector<8x256xf32>
    %195 = arith.addf %194, %191 : vector<8x256xf32>
    %196 = arith.negf %195 : vector<8x256xf32>
    %197 = math.exp %196 : vector<8x256xf32>
    %cst_110 = arith.constant 1.000000e+00 : f32
    %198 = vector.broadcast %cst_110 : f32 to vector<8x256xf32>
    %199 = arith.addf %198, %197 : vector<8x256xf32>
    %200 = arith.divf %198, %199 : vector<8x256xf32>
    %201 = vector.extract_strided_slice %195 {offsets = [0, 128], sizes = [8, 64], strides = [1, 1]} : vector<8x256xf32> to vector<8x64xf32>
    %202 = math.tanh %201 : vector<8x64xf32>
    %203 = vector.extract_strided_slice %200 {offsets = [0, 64], sizes = [8, 64], strides = [1, 1]} : vector<8x256xf32> to vector<8x64xf32>
    %204 = arith.mulf %203, %182 : vector<8x64xf32>
    %205 = vector.extract_strided_slice %200 {offsets = [0, 0], sizes = [8, 64], strides = [1, 1]} : vector<8x256xf32> to vector<8x64xf32>
    %206 = arith.mulf %205, %202 : vector<8x64xf32>
    %207 = arith.addf %204, %206 : vector<8x64xf32>
    %208 = vector.extract_strided_slice %200 {offsets = [0, 192], sizes = [8, 64], strides = [1, 1]} : vector<8x256xf32> to vector<8x64xf32>
    %209 = math.tanh %207 : vector<8x64xf32>
    %210 = arith.mulf %208, %209 : vector<8x64xf32>
    %211 = vector.extract_strided_slice %210 {offsets = [0, 0], sizes = [8, 32], strides = [1, 1]} : vector<8x64xf32> to vector<8x32xf32>
    %c48_111 = arith.constant 48 : index
    %c0_112 = arith.constant 0 : index
    %212 = vector.load %arg15[%c48_111, %c0_112] : memref<64x64xf32, #tpu.memory_space<vmem>>, vector<8x32xf32>
    tpu.vector_store %arg15[%c48_111, %c0_112], %211 {strides = array<i32>} : memref<64x64xf32, #tpu.memory_space<vmem>>, vector<8x32xf32>,
    %213 = vector.extract_strided_slice %210 {offsets = [0, 32], sizes = [8, 32], strides = [1, 1]} : vector<8x64xf32> to vector<8x32xf32>
    %c8_113 = arith.constant 8 : index
    %c32_114 = arith.constant 32 : index
    %214 = vector.load %arg15[%c8_113, %c32_114] : memref<64x64xf32, #tpu.memory_space<vmem>>, vector<8x32xf32>
    tpu.vector_store %arg15[%c8_113, %c32_114], %213 {strides = array<i32>} : memref<64x64xf32, #tpu.memory_space<vmem>>, vector<8x32xf32>,
    %215 = arith.truncf %210 : vector<8x64xf32> to vector<8x64xbf16>
    %cst_115 = arith.constant dense<0.000000e+00> : vector<8x256xf32>
    %216 = tpu.matmul %215, %37, %cst_115 {dimension_numbers = #tpu.dot_dimension_numbers<[1], [0], [0], [1], [0, 0, 1, 1], [], []>} : vector<8x64xbf16>, vector<64x256xbf16>, vector<8x256xf32> -> vector<8x256xf32>
    %c56_116 = arith.constant 56 : index
    %c0_117 = arith.constant 0 : index
    %217 = vector.load %arg13[%c56_116, %c0_117] : memref<64x256xf32, #tpu.memory_space<vmem>>, vector<8x256xf32>
    %c0_118 = arith.constant 0 : index
    %c0_119 = arith.constant 0 : index
    %218 = vector.load %arg14[%c0_118, %c0_119] : memref<64x256xf32, #tpu.memory_space<vmem>>, vector<8x256xf32>
    %219 = arith.addf %217, %218 : vector<8x256xf32>
    %220 = arith.addf %219, %216 : vector<8x256xf32>
    %221 = arith.negf %220 : vector<8x256xf32>
    %222 = math.exp %221 : vector<8x256xf32>
    %cst_120 = arith.constant 1.000000e+00 : f32
    %223 = vector.broadcast %cst_120 : f32 to vector<8x256xf32>
    %224 = arith.addf %223, %222 : vector<8x256xf32>
    %225 = arith.divf %223, %224 : vector<8x256xf32>
    %226 = vector.extract_strided_slice %220 {offsets = [0, 128], sizes = [8, 64], strides = [1, 1]} : vector<8x256xf32> to vector<8x64xf32>
    %227 = math.tanh %226 : vector<8x64xf32>
    %228 = vector.extract_strided_slice %225 {offsets = [0, 64], sizes = [8, 64], strides = [1, 1]} : vector<8x256xf32> to vector<8x64xf32>
    %229 = arith.mulf %228, %207 : vector<8x64xf32>
    %230 = vector.extract_strided_slice %225 {offsets = [0, 0], sizes = [8, 64], strides = [1, 1]} : vector<8x256xf32> to vector<8x64xf32>
    %231 = arith.mulf %230, %227 : vector<8x64xf32>
    %232 = arith.addf %229, %231 : vector<8x64xf32>
    %233 = vector.extract_strided_slice %225 {offsets = [0, 192], sizes = [8, 64], strides = [1, 1]} : vector<8x256xf32> to vector<8x64xf32>
    %234 = math.tanh %232 : vector<8x64xf32>
    %235 = arith.mulf %233, %234 : vector<8x64xf32>
    %236 = vector.extract_strided_slice %235 {offsets = [0, 0], sizes = [8, 32], strides = [1, 1]} : vector<8x64xf32> to vector<8x32xf32>
    %c56_121 = arith.constant 56 : index
    %c0_122 = arith.constant 0 : index
    %237 = vector.load %arg15[%c56_121, %c0_122] : memref<64x64xf32, #tpu.memory_space<vmem>>, vector<8x32xf32>
    tpu.vector_store %arg15[%c56_121, %c0_122], %236 {strides = array<i32>} : memref<64x64xf32, #tpu.memory_space<vmem>>, vector<8x32xf32>,
    %238 = vector.extract_strided_slice %235 {offsets = [0, 32], sizes = [8, 32], strides = [1, 1]} : vector<8x64xf32> to vector<8x32xf32>
    %c0_123 = arith.constant 0 : index
    %c32_124 = arith.constant 32 : index
    %239 = vector.load %arg15[%c0_123, %c32_124] : memref<64x64xf32, #tpu.memory_space<vmem>>, vector<8x32xf32>
    tpu.vector_store %arg15[%c0_123, %c32_124], %238 {strides = array<i32>} : memref<64x64xf32, #tpu.memory_space<vmem>>, vector<8x32xf32>,
    %c0_125 = arith.constant 0 : index
    %c0_126 = arith.constant 0 : index
    %240 = vector.load %arg15[%c0_125, %c0_126] : memref<64x64xf32, #tpu.memory_space<vmem>>, vector<64x64xf32>
    %241 = arith.truncf %240 : vector<64x64xf32> to vector<64x64xbf16>
    %c0_127 = arith.constant 0 : index
    %c0_128 = arith.constant 0 : index
    %242 = vector.load %arg5[%c0_127, %c0_128] : memref<64x256xbf16, #tpu.memory_space<vmem>>, vector<64x256xbf16>
    %cst_129 = arith.constant dense<0.000000e+00> : vector<64x256xf32>
    %243 = tpu.matmul %241, %242, %cst_129 {dimension_numbers = #tpu.dot_dimension_numbers<[1], [0], [0], [1], [0, 0, 1, 1], [], []>} : vector<64x64xbf16>, vector<64x256xbf16>, vector<64x256xf32> -> vector<64x256xf32>
    %c0_130 = arith.constant 0 : index
    %c0_131 = arith.constant 0 : index
    %244 = vector.load %arg7[%c0_130, %c0_131] : memref<1x256xf32, #tpu.memory_space<vmem>>, vector<1x256xf32>
    %245 = vector.broadcast %244 : vector<1x256xf32> to vector<64x256xf32>
    %246 = arith.addf %243, %245 : vector<64x256xf32>
    %c0_132 = arith.constant 0 : index
    %c0_133 = arith.constant 0 : index
    %247 = vector.load %arg13[%c0_132, %c0_133] : memref<64x256xf32, #tpu.memory_space<vmem>>, vector<64x256xf32>
    tpu.vector_store %arg13[%c0_132, %c0_133], %246 {strides = array<i32>} : memref<64x256xf32, #tpu.memory_space<vmem>>, vector<64x256xf32>,
    %c0_134 = arith.constant 0 : index
    %c0_135 = arith.constant 0 : index
    %248 = vector.load %arg6[%c0_134, %c0_135] : memref<64x256xbf16, #tpu.memory_space<vmem>>, vector<64x256xbf16>
    %cst_136 = arith.constant dense<0.000000e+00> : vector<64x256xf32>
    %249 = tpu.matmul %241, %248, %cst_136 {dimension_numbers = #tpu.dot_dimension_numbers<[1], [0], [0], [1], [0, 0, 1, 1], [], []>} : vector<64x64xbf16>, vector<64x256xbf16>, vector<64x256xf32> -> vector<64x256xf32>
    %c0_137 = arith.constant 0 : index
    %c0_138 = arith.constant 0 : index
    %250 = vector.load %arg14[%c0_137, %c0_138] : memref<64x256xf32, #tpu.memory_space<vmem>>, vector<64x256xf32>
    tpu.vector_store %arg14[%c0_137, %c0_138], %249 {strides = array<i32>} : memref<64x256xf32, #tpu.memory_space<vmem>>, vector<64x256xf32>,
    %c0_139 = arith.constant 0 : index
    %c0_140 = arith.constant 0 : index
    %251 = vector.load %arg8[%c0_139, %c0_140] : memref<64x256xbf16, #tpu.memory_space<vmem>>, vector<64x256xbf16>
    %cst_141 = arith.constant 0.000000e+00 : f32
    %252 = vector.broadcast %cst_141 : f32 to vector<8x64xf32>
    %cst_142 = arith.constant 0.000000e+00 : f32
    %253 = vector.broadcast %cst_142 : f32 to vector<8x64xf32>
    %254 = arith.truncf %252 : vector<8x64xf32> to vector<8x64xbf16>
    %cst_143 = arith.constant dense<0.000000e+00> : vector<8x256xf32>
    %255 = tpu.matmul %254, %251, %cst_143 {dimension_numbers = #tpu.dot_dimension_numbers<[1], [0], [0], [1], [0, 0, 1, 1], [], []>} : vector<8x64xbf16>, vector<64x256xbf16>, vector<8x256xf32> -> vector<8x256xf32>
    %c0_144 = arith.constant 0 : index
    %c0_145 = arith.constant 0 : index
    %256 = vector.load %arg13[%c0_144, %c0_145] : memref<64x256xf32, #tpu.memory_space<vmem>>, vector<8x256xf32>
    %c56_146 = arith.constant 56 : index
    %c0_147 = arith.constant 0 : index
    %257 = vector.load %arg14[%c56_146, %c0_147] : memref<64x256xf32, #tpu.memory_space<vmem>>, vector<8x256xf32>
    %258 = arith.addf %256, %257 : vector<8x256xf32>
    %259 = arith.addf %258, %255 : vector<8x256xf32>
    %260 = arith.negf %259 : vector<8x256xf32>
    %261 = math.exp %260 : vector<8x256xf32>
    %cst_148 = arith.constant 1.000000e+00 : f32
    %262 = vector.broadcast %cst_148 : f32 to vector<8x256xf32>
    %263 = arith.addf %262, %261 : vector<8x256xf32>
    %264 = arith.divf %262, %263 : vector<8x256xf32>
    %265 = vector.extract_strided_slice %259 {offsets = [0, 128], sizes = [8, 64], strides = [1, 1]} : vector<8x256xf32> to vector<8x64xf32>
    %266 = math.tanh %265 : vector<8x64xf32>
    %267 = vector.extract_strided_slice %264 {offsets = [0, 64], sizes = [8, 64], strides = [1, 1]} : vector<8x256xf32> to vector<8x64xf32>
    %268 = arith.mulf %267, %253 : vector<8x64xf32>
    %269 = vector.extract_strided_slice %264 {offsets = [0, 0], sizes = [8, 64], strides = [1, 1]} : vector<8x256xf32> to vector<8x64xf32>
    %270 = arith.mulf %269, %266 : vector<8x64xf32>
    %271 = arith.addf %268, %270 : vector<8x64xf32>
    %272 = vector.extract_strided_slice %264 {offsets = [0, 192], sizes = [8, 64], strides = [1, 1]} : vector<8x256xf32> to vector<8x64xf32>
    %273 = math.tanh %271 : vector<8x64xf32>
    %274 = arith.mulf %272, %273 : vector<8x64xf32>
    %275 = arith.truncf %274 : vector<8x64xf32> to vector<8x64xbf16>
    %cst_149 = arith.constant dense<0.000000e+00> : vector<8x256xf32>
    %276 = tpu.matmul %275, %251, %cst_149 {dimension_numbers = #tpu.dot_dimension_numbers<[1], [0], [0], [1], [0, 0, 1, 1], [], []>} : vector<8x64xbf16>, vector<64x256xbf16>, vector<8x256xf32> -> vector<8x256xf32>
    %c8_150 = arith.constant 8 : index
    %c0_151 = arith.constant 0 : index
    %277 = vector.load %arg13[%c8_150, %c0_151] : memref<64x256xf32, #tpu.memory_space<vmem>>, vector<8x256xf32>
    %c48_152 = arith.constant 48 : index
    %c0_153 = arith.constant 0 : index
    %278 = vector.load %arg14[%c48_152, %c0_153] : memref<64x256xf32, #tpu.memory_space<vmem>>, vector<8x256xf32>
    %279 = arith.addf %277, %278 : vector<8x256xf32>
    %280 = arith.addf %279, %276 : vector<8x256xf32>
    %281 = arith.negf %280 : vector<8x256xf32>
    %282 = math.exp %281 : vector<8x256xf32>
    %cst_154 = arith.constant 1.000000e+00 : f32
    %283 = vector.broadcast %cst_154 : f32 to vector<8x256xf32>
    %284 = arith.addf %283, %282 : vector<8x256xf32>
    %285 = arith.divf %283, %284 : vector<8x256xf32>
    %286 = vector.extract_strided_slice %280 {offsets = [0, 128], sizes = [8, 64], strides = [1, 1]} : vector<8x256xf32> to vector<8x64xf32>
    %287 = math.tanh %286 : vector<8x64xf32>
    %288 = vector.extract_strided_slice %285 {offsets = [0, 64], sizes = [8, 64], strides = [1, 1]} : vector<8x256xf32> to vector<8x64xf32>
    %289 = arith.mulf %288, %271 : vector<8x64xf32>
    %290 = vector.extract_strided_slice %285 {offsets = [0, 0], sizes = [8, 64], strides = [1, 1]} : vector<8x256xf32> to vector<8x64xf32>
    %291 = arith.mulf %290, %287 : vector<8x64xf32>
    %292 = arith.addf %289, %291 : vector<8x64xf32>
    %293 = vector.extract_strided_slice %285 {offsets = [0, 192], sizes = [8, 64], strides = [1, 1]} : vector<8x256xf32> to vector<8x64xf32>
    %294 = math.tanh %292 : vector<8x64xf32>
    %295 = arith.mulf %293, %294 : vector<8x64xf32>
    %296 = arith.truncf %295 : vector<8x64xf32> to vector<8x64xbf16>
    %cst_155 = arith.constant dense<0.000000e+00> : vector<8x256xf32>
    %297 = tpu.matmul %296, %251, %cst_155 {dimension_numbers = #tpu.dot_dimension_numbers<[1], [0], [0], [1], [0, 0, 1, 1], [], []>} : vector<8x64xbf16>, vector<64x256xbf16>, vector<8x256xf32> -> vector<8x256xf32>
    %c16_156 = arith.constant 16 : index
    %c0_157 = arith.constant 0 : index
    %298 = vector.load %arg13[%c16_156, %c0_157] : memref<64x256xf32, #tpu.memory_space<vmem>>, vector<8x256xf32>
    %c40_158 = arith.constant 40 : index
    %c0_159 = arith.constant 0 : index
    %299 = vector.load %arg14[%c40_158, %c0_159] : memref<64x256xf32, #tpu.memory_space<vmem>>, vector<8x256xf32>
    %300 = arith.addf %298, %299 : vector<8x256xf32>
    %301 = arith.addf %300, %297 : vector<8x256xf32>
    %302 = arith.negf %301 : vector<8x256xf32>
    %303 = math.exp %302 : vector<8x256xf32>
    %cst_160 = arith.constant 1.000000e+00 : f32
    %304 = vector.broadcast %cst_160 : f32 to vector<8x256xf32>
    %305 = arith.addf %304, %303 : vector<8x256xf32>
    %306 = arith.divf %304, %305 : vector<8x256xf32>
    %307 = vector.extract_strided_slice %301 {offsets = [0, 128], sizes = [8, 64], strides = [1, 1]} : vector<8x256xf32> to vector<8x64xf32>
    %308 = math.tanh %307 : vector<8x64xf32>
    %309 = vector.extract_strided_slice %306 {offsets = [0, 64], sizes = [8, 64], strides = [1, 1]} : vector<8x256xf32> to vector<8x64xf32>
    %310 = arith.mulf %309, %292 : vector<8x64xf32>
    %311 = vector.extract_strided_slice %306 {offsets = [0, 0], sizes = [8, 64], strides = [1, 1]} : vector<8x256xf32> to vector<8x64xf32>
    %312 = arith.mulf %311, %308 : vector<8x64xf32>
    %313 = arith.addf %310, %312 : vector<8x64xf32>
    %314 = vector.extract_strided_slice %306 {offsets = [0, 192], sizes = [8, 64], strides = [1, 1]} : vector<8x256xf32> to vector<8x64xf32>
    %315 = math.tanh %313 : vector<8x64xf32>
    %316 = arith.mulf %314, %315 : vector<8x64xf32>
    %317 = arith.truncf %316 : vector<8x64xf32> to vector<8x64xbf16>
    %cst_161 = arith.constant dense<0.000000e+00> : vector<8x256xf32>
    %318 = tpu.matmul %317, %251, %cst_161 {dimension_numbers = #tpu.dot_dimension_numbers<[1], [0], [0], [1], [0, 0, 1, 1], [], []>} : vector<8x64xbf16>, vector<64x256xbf16>, vector<8x256xf32> -> vector<8x256xf32>
    %c24_162 = arith.constant 24 : index
    %c0_163 = arith.constant 0 : index
    %319 = vector.load %arg13[%c24_162, %c0_163] : memref<64x256xf32, #tpu.memory_space<vmem>>, vector<8x256xf32>
    %c32_164 = arith.constant 32 : index
    %c0_165 = arith.constant 0 : index
    %320 = vector.load %arg14[%c32_164, %c0_165] : memref<64x256xf32, #tpu.memory_space<vmem>>, vector<8x256xf32>
    %321 = arith.addf %319, %320 : vector<8x256xf32>
    %322 = arith.addf %321, %318 : vector<8x256xf32>
    %323 = arith.negf %322 : vector<8x256xf32>
    %324 = math.exp %323 : vector<8x256xf32>
    %cst_166 = arith.constant 1.000000e+00 : f32
    %325 = vector.broadcast %cst_166 : f32 to vector<8x256xf32>
    %326 = arith.addf %325, %324 : vector<8x256xf32>
    %327 = arith.divf %325, %326 : vector<8x256xf32>
    %328 = vector.extract_strided_slice %322 {offsets = [0, 128], sizes = [8, 64], strides = [1, 1]} : vector<8x256xf32> to vector<8x64xf32>
    %329 = math.tanh %328 : vector<8x64xf32>
    %330 = vector.extract_strided_slice %327 {offsets = [0, 64], sizes = [8, 64], strides = [1, 1]} : vector<8x256xf32> to vector<8x64xf32>
    %331 = arith.mulf %330, %313 : vector<8x64xf32>
    %332 = vector.extract_strided_slice %327 {offsets = [0, 0], sizes = [8, 64], strides = [1, 1]} : vector<8x256xf32> to vector<8x64xf32>
    %333 = arith.mulf %332, %329 : vector<8x64xf32>
    %334 = arith.addf %331, %333 : vector<8x64xf32>
    %335 = vector.extract_strided_slice %327 {offsets = [0, 192], sizes = [8, 64], strides = [1, 1]} : vector<8x256xf32> to vector<8x64xf32>
    %336 = math.tanh %334 : vector<8x64xf32>
    %337 = arith.mulf %335, %336 : vector<8x64xf32>
    %338 = arith.truncf %337 : vector<8x64xf32> to vector<8x64xbf16>
    %cst_167 = arith.constant dense<0.000000e+00> : vector<8x256xf32>
    %339 = tpu.matmul %338, %251, %cst_167 {dimension_numbers = #tpu.dot_dimension_numbers<[1], [0], [0], [1], [0, 0, 1, 1], [], []>} : vector<8x64xbf16>, vector<64x256xbf16>, vector<8x256xf32> -> vector<8x256xf32>
    %c32_168 = arith.constant 32 : index
    %c0_169 = arith.constant 0 : index
    %340 = vector.load %arg13[%c32_168, %c0_169] : memref<64x256xf32, #tpu.memory_space<vmem>>, vector<8x256xf32>
    %c24_170 = arith.constant 24 : index
    %c0_171 = arith.constant 0 : index
    %341 = vector.load %arg14[%c24_170, %c0_171] : memref<64x256xf32, #tpu.memory_space<vmem>>, vector<8x256xf32>
    %342 = arith.addf %340, %341 : vector<8x256xf32>
    %343 = arith.addf %342, %339 : vector<8x256xf32>
    %344 = arith.negf %343 : vector<8x256xf32>
    %345 = math.exp %344 : vector<8x256xf32>
    %cst_172 = arith.constant 1.000000e+00 : f32
    %346 = vector.broadcast %cst_172 : f32 to vector<8x256xf32>
    %347 = arith.addf %346, %345 : vector<8x256xf32>
    %348 = arith.divf %346, %347 : vector<8x256xf32>
    %349 = vector.extract_strided_slice %343 {offsets = [0, 128], sizes = [8, 64], strides = [1, 1]} : vector<8x256xf32> to vector<8x64xf32>
    %350 = math.tanh %349 : vector<8x64xf32>
    %351 = vector.extract_strided_slice %348 {offsets = [0, 64], sizes = [8, 64], strides = [1, 1]} : vector<8x256xf32> to vector<8x64xf32>
    %352 = arith.mulf %351, %334 : vector<8x64xf32>
    %353 = vector.extract_strided_slice %348 {offsets = [0, 0], sizes = [8, 64], strides = [1, 1]} : vector<8x256xf32> to vector<8x64xf32>
    %354 = arith.mulf %353, %350 : vector<8x64xf32>
    %355 = arith.addf %352, %354 : vector<8x64xf32>
    %356 = vector.extract_strided_slice %348 {offsets = [0, 192], sizes = [8, 64], strides = [1, 1]} : vector<8x256xf32> to vector<8x64xf32>
    %357 = math.tanh %355 : vector<8x64xf32>
    %358 = arith.mulf %356, %357 : vector<8x64xf32>
    %359 = arith.truncf %358 : vector<8x64xf32> to vector<8x64xbf16>
    %cst_173 = arith.constant dense<0.000000e+00> : vector<8x256xf32>
    %360 = tpu.matmul %359, %251, %cst_173 {dimension_numbers = #tpu.dot_dimension_numbers<[1], [0], [0], [1], [0, 0, 1, 1], [], []>} : vector<8x64xbf16>, vector<64x256xbf16>, vector<8x256xf32> -> vector<8x256xf32>
    %c40_174 = arith.constant 40 : index
    %c0_175 = arith.constant 0 : index
    %361 = vector.load %arg13[%c40_174, %c0_175] : memref<64x256xf32, #tpu.memory_space<vmem>>, vector<8x256xf32>
    %c16_176 = arith.constant 16 : index
    %c0_177 = arith.constant 0 : index
    %362 = vector.load %arg14[%c16_176, %c0_177] : memref<64x256xf32, #tpu.memory_space<vmem>>, vector<8x256xf32>
    %363 = arith.addf %361, %362 : vector<8x256xf32>
    %364 = arith.addf %363, %360 : vector<8x256xf32>
    %365 = arith.negf %364 : vector<8x256xf32>
    %366 = math.exp %365 : vector<8x256xf32>
    %cst_178 = arith.constant 1.000000e+00 : f32
    %367 = vector.broadcast %cst_178 : f32 to vector<8x256xf32>
    %368 = arith.addf %367, %366 : vector<8x256xf32>
    %369 = arith.divf %367, %368 : vector<8x256xf32>
    %370 = vector.extract_strided_slice %364 {offsets = [0, 128], sizes = [8, 64], strides = [1, 1]} : vector<8x256xf32> to vector<8x64xf32>
    %371 = math.tanh %370 : vector<8x64xf32>
    %372 = vector.extract_strided_slice %369 {offsets = [0, 64], sizes = [8, 64], strides = [1, 1]} : vector<8x256xf32> to vector<8x64xf32>
    %373 = arith.mulf %372, %355 : vector<8x64xf32>
    %374 = vector.extract_strided_slice %369 {offsets = [0, 0], sizes = [8, 64], strides = [1, 1]} : vector<8x256xf32> to vector<8x64xf32>
    %375 = arith.mulf %374, %371 : vector<8x64xf32>
    %376 = arith.addf %373, %375 : vector<8x64xf32>
    %377 = vector.extract_strided_slice %369 {offsets = [0, 192], sizes = [8, 64], strides = [1, 1]} : vector<8x256xf32> to vector<8x64xf32>
    %378 = math.tanh %376 : vector<8x64xf32>
    %379 = arith.mulf %377, %378 : vector<8x64xf32>
    %380 = arith.truncf %379 : vector<8x64xf32> to vector<8x64xbf16>
    %cst_179 = arith.constant dense<0.000000e+00> : vector<8x256xf32>
    %381 = tpu.matmul %380, %251, %cst_179 {dimension_numbers = #tpu.dot_dimension_numbers<[1], [0], [0], [1], [0, 0, 1, 1], [], []>} : vector<8x64xbf16>, vector<64x256xbf16>, vector<8x256xf32> -> vector<8x256xf32>
    %c48_180 = arith.constant 48 : index
    %c0_181 = arith.constant 0 : index
    %382 = vector.load %arg13[%c48_180, %c0_181] : memref<64x256xf32, #tpu.memory_space<vmem>>, vector<8x256xf32>
    %c8_182 = arith.constant 8 : index
    %c0_183 = arith.constant 0 : index
    %383 = vector.load %arg14[%c8_182, %c0_183] : memref<64x256xf32, #tpu.memory_space<vmem>>, vector<8x256xf32>
    %384 = arith.addf %382, %383 : vector<8x256xf32>
    %385 = arith.addf %384, %381 : vector<8x256xf32>
    %386 = arith.negf %385 : vector<8x256xf32>
    %387 = math.exp %386 : vector<8x256xf32>
    %cst_184 = arith.constant 1.000000e+00 : f32
    %388 = vector.broadcast %cst_184 : f32 to vector<8x256xf32>
    %389 = arith.addf %388, %387 : vector<8x256xf32>
    %390 = arith.divf %388, %389 : vector<8x256xf32>
    %391 = vector.extract_strided_slice %385 {offsets = [0, 128], sizes = [8, 64], strides = [1, 1]} : vector<8x256xf32> to vector<8x64xf32>
    %392 = math.tanh %391 : vector<8x64xf32>
    %393 = vector.extract_strided_slice %390 {offsets = [0, 64], sizes = [8, 64], strides = [1, 1]} : vector<8x256xf32> to vector<8x64xf32>
    %394 = arith.mulf %393, %376 : vector<8x64xf32>
    %395 = vector.extract_strided_slice %390 {offsets = [0, 0], sizes = [8, 64], strides = [1, 1]} : vector<8x256xf32> to vector<8x64xf32>
    %396 = arith.mulf %395, %392 : vector<8x64xf32>
    %397 = arith.addf %394, %396 : vector<8x64xf32>
    %398 = vector.extract_strided_slice %390 {offsets = [0, 192], sizes = [8, 64], strides = [1, 1]} : vector<8x256xf32> to vector<8x64xf32>
    %399 = math.tanh %397 : vector<8x64xf32>
    %400 = arith.mulf %398, %399 : vector<8x64xf32>
    %401 = arith.truncf %400 : vector<8x64xf32> to vector<8x64xbf16>
    %cst_185 = arith.constant dense<0.000000e+00> : vector<8x256xf32>
    %402 = tpu.matmul %401, %251, %cst_185 {dimension_numbers = #tpu.dot_dimension_numbers<[1], [0], [0], [1], [0, 0, 1, 1], [], []>} : vector<8x64xbf16>, vector<64x256xbf16>, vector<8x256xf32> -> vector<8x256xf32>
    %c56_186 = arith.constant 56 : index
    %c0_187 = arith.constant 0 : index
    %403 = vector.load %arg13[%c56_186, %c0_187] : memref<64x256xf32, #tpu.memory_space<vmem>>, vector<8x256xf32>
    %c0_188 = arith.constant 0 : index
    %c0_189 = arith.constant 0 : index
    %404 = vector.load %arg14[%c0_188, %c0_189] : memref<64x256xf32, #tpu.memory_space<vmem>>, vector<8x256xf32>
    %405 = arith.addf %403, %404 : vector<8x256xf32>
    %406 = arith.addf %405, %402 : vector<8x256xf32>
    %407 = arith.negf %406 : vector<8x256xf32>
    %408 = math.exp %407 : vector<8x256xf32>
    %cst_190 = arith.constant 1.000000e+00 : f32
    %409 = vector.broadcast %cst_190 : f32 to vector<8x256xf32>
    %410 = arith.addf %409, %408 : vector<8x256xf32>
    %411 = arith.divf %409, %410 : vector<8x256xf32>
    %412 = vector.extract_strided_slice %406 {offsets = [0, 128], sizes = [8, 64], strides = [1, 1]} : vector<8x256xf32> to vector<8x64xf32>
    %413 = math.tanh %412 : vector<8x64xf32>
    %414 = vector.extract_strided_slice %411 {offsets = [0, 64], sizes = [8, 64], strides = [1, 1]} : vector<8x256xf32> to vector<8x64xf32>
    %415 = arith.mulf %414, %397 : vector<8x64xf32>
    %416 = vector.extract_strided_slice %411 {offsets = [0, 0], sizes = [8, 64], strides = [1, 1]} : vector<8x256xf32> to vector<8x64xf32>
    %417 = arith.mulf %416, %413 : vector<8x64xf32>
    %418 = arith.addf %415, %417 : vector<8x64xf32>
    %419 = vector.extract_strided_slice %411 {offsets = [0, 192], sizes = [8, 64], strides = [1, 1]} : vector<8x256xf32> to vector<8x64xf32>
    %420 = math.tanh %418 : vector<8x64xf32>
    %421 = arith.mulf %419, %420 : vector<8x64xf32>
    %422 = vector.extract_strided_slice %421 {offsets = [0, 0], sizes = [8, 32], strides = [1, 1]} : vector<8x64xf32> to vector<8x32xf32>
    %423 = vector.extract_strided_slice %274 {offsets = [0, 32], sizes = [8, 32], strides = [1, 1]} : vector<8x64xf32> to vector<8x32xf32>
    %424 = tpu.concatenate %422, %423 in 1 : vector<8x32xf32>, vector<8x32xf32> -> vector<8x64xf32>
    %425 = arith.truncf %424 : vector<8x64xf32> to vector<8x64xbf16>
    %c0_191 = arith.constant 0 : index
    %c0_192 = arith.constant 0 : index
    %426 = vector.load %arg9[%c0_191, %c0_192] : memref<64x8xbf16, #tpu.memory_space<vmem>>, vector<64x8xbf16>
    %cst_193 = arith.constant dense<0.000000e+00> : vector<8x8xf32>
    %427 = tpu.matmul %425, %426, %cst_193 {dimension_numbers = #tpu.dot_dimension_numbers<[1], [0], [0], [1], [0, 0, 1, 1], [], []>} : vector<8x64xbf16>, vector<64x8xbf16>, vector<8x8xf32> -> vector<8x8xf32>
    %c0_194 = arith.constant 0 : index
    %c0_195 = arith.constant 0 : index
    %428 = vector.load %arg10[%c0_194, %c0_195] : memref<1x8xf32, #tpu.memory_space<vmem>>, vector<1x8xf32>
    %429 = vector.broadcast %428 : vector<1x8xf32> to vector<8x8xf32>
    %430 = arith.addf %427, %429 : vector<8x8xf32>
    %431 = vector.extract_strided_slice %430 {offsets = [0, 0], sizes = [2, 8], strides = [1, 1]} : vector<8x8xf32> to vector<2x8xf32>
    %c0_196 = arith.constant 0 : index
    %c0_197 = arith.constant 0 : index
    %432 = vector.load %arg11[%c0_196, %c0_197] : memref<2x8xf32, #tpu.memory_space<vmem>>, vector<2x8xf32>
    tpu.vector_store %arg11[%c0_196, %c0_197], %431 {strides = array<i32>} : memref<2x8xf32, #tpu.memory_space<vmem>>, vector<2x8xf32>,
    return
  }
}

</mosaic_0001>

<bundles_post_ra>
// kernel: kernel_rnn_bi_forward.1
= control target key start
LH: loop header
LB: loop body
LE: loop exit
PB: predicated region body
PF: predicated region fallthrough
CT: control target
= control target key end

     0   :  { %16 = vsyncpa [#allocation7], 0  ;;  %s3487_s0 = inlined_call_operand.hbm [shape: f32[2,8,16], index: 0, kind: input, shape index: {}]   ;;  %s3488_s1 = inlined_call_operand.hbm [shape: bf16[16,256], index: 1, kind: input, shape index: {}]   ;;  %s3489_s2 = inlined_call_operand.hbm [shape: bf16[16,256], index: 2, kind: input, shape index: {}]   ;;  %s3490_s3 = inlined_call_operand.vmem [shape: f32[1,256], index: 3, kind: input, shape index: {}]   ;;  %s3491_s4 = inlined_call_operand.vmem [shape: bf16[64,256], index: 4, kind: input, shape index: {}]   ;;  %s3492_s5 = inlined_call_operand.hbm [shape: bf16[64,256], index: 5, kind: input, shape index: {}]   ;;  %s3493_s6 = inlined_call_operand.hbm [shape: bf16[64,256], index: 6, kind: input, shape index: {}]   ;;  %s3494_s7 = inlined_call_operand.vmem [shape: f32[1,256], index: 7, kind: input, shape index: {}]   ;;  %s3495_s8 = inlined_call_operand.hbm [shape: bf16[64,256], index: 8, kind: input, shape index: {}]   ;;  %s3496_s9 = inlined_call_operand.vmem [shape: bf16[64,8], index: 9, kind: input, shape index: {}]   ;;  %s3497_s10 = inlined_call_operand.vmem [shape: f32[1,8], index: 10, kind: input, shape index: {}]   ;;  %s3498_s11 = inlined_call_operand.hbm [shape: f32[2,8], index: 11, kind: output, shape index: {}]  }
   0x1   :  { %17 = vsyncpa [#allocation10], 0 }
   0x2   :  { %18 = vsyncpa [#allocation13], 0 }
   0x3   :  { %19 = vsyncpa [#allocation16], 0 }
   0x4   :  { %20 = vsyncpa [#allocation8], 0  ;;  %s2796_s17 = smov [#allocation9]   ;;  %s2797_s19 = smov [#allocation12]  }
   0x5   :  { %s38_s18 = sshll.u32 %s2796_s17, 4  ;;  %s66_s20 = sshll.u32 %s2797_s19, 4  ;;  %s39_s18 = int_to_ptr.vmem [resolvable:$true] %s38_s18  ;;  %s2869_s20 = int_to_ptr.vmem [resolvable:$true] %s66_s20 }
   0x6   :  { %s2632_s23 = scalar_lea.hbm %s3488_s1, 256 }
   0x7   :  { %p2633_p0 = scmp.ne.s32.totalorder %s3488_s1, %s2632_s23  ;;  %p2636_p1 = scmp.lt.u32.totalorder %s2632_s23, %s3488_s1 }
   0x9   :  { %p2638_p2 = pnand %p2636_p1, %p2633_p0 }
   0xb   :  { %2641 = shalt.err (!%p2638_p2)
}
   0xc   :  { %s2642_s28 = scalar_lea.vmem %s39_s18, 256  ;;  %p2647_p4 = scmp.lt.s32.totalorder %s39_s18, %s39_s18 }
   0xd   :  { %p2643_p3 = scmp.ne.s32.totalorder %s39_s18, %s2642_s28  ;;  %p2648_p5 = scmp.lt.s32.totalorder %s2642_s28, %s2642_s28 }
   0xf   :  { %p2649_p6 = por %p2648_p5, %p2647_p4 }
  0x11   :  { %p2650_p7 = pnand %p2649_p6, %p2643_p3 }
  0x13   :  { %2653 = shalt.err (!%p2650_p7)
}
  0x14   :  { %s2798_s29 = smov 128   ;;  %s2799_s30 = smov 8  }
  0x15   :  { %44 = dma.hbm_to_vmem [thread:$0]  %s3488_s1, 256, %s39_s18, [#allocation10], %s2798_s29, %s2798_s29, %s2799_s30  }
  0x16   :  { %s2654_s16 = scalar_lea.hbm %s3492_s5, 1024 }
  0x17   :  { %p2655_p8 = scmp.ne.s32.totalorder %s3492_s5, %s2654_s16  ;;  %p2658_p9 = scmp.lt.u32.totalorder %s2654_s16, %s3492_s5 }
  0x19   :  { %p2660_p10 = pnand %p2658_p9, %p2655_p8 }
  0x1b   :  { %2663 = shalt.err (!%p2660_p10)
}
  0x1c   :  { %s2664_s23 = scalar_lea.vmem %s2869_s20, 1024  ;;  %p2669_p12 = scmp.lt.s32.totalorder %s2869_s20, %s2869_s20 }
  0x1d   :  { %p2665_p11 = scmp.ne.s32.totalorder %s2869_s20, %s2664_s23  ;;  %p2670_p13 = scmp.lt.s32.totalorder %s2664_s23, %s2664_s23 }
  0x1f   :  { %p2671_p0 = por %p2670_p13, %p2669_p12 }
  0x21   :  { %p2672_p1 = pnand %p2671_p0, %p2665_p11 }
  0x23   :  { %2675 = shalt.err (!%p2672_p1)
}
  0x24   :  { %72 = dma.hbm_to_vmem [thread:$0]  %s3492_s5, 1024, %s2869_s20, [#allocation13], %s2798_s29, %s2798_s29, %s2799_s30  }
  0x25   :  { %s2800_s24 = smov [#allocation6]   ;;  %s2801_s26 = smov [#allocation11]  }
  0x26   :  { %s26_s25 = sshll.u32 %s2800_s24, 4  ;;  %s50_s27 = sshll.u32 %s2801_s26, 4  ;;  %s27_s25 = int_to_ptr.vmem [resolvable:$true] %s26_s25  ;;  %s2906_s27 = int_to_ptr.vmem [resolvable:$true] %s50_s27 }
  0x27   :  { %s2676_s13 = scalar_lea.hbm %s3487_s0, 256 }
  0x28   :  { %p2677_p2 = scmp.ne.s32.totalorder %s3487_s0, %s2676_s13  ;;  %p2680_p3 = scmp.lt.u32.totalorder %s2676_s13, %s3487_s0 }
  0x2a   :  { %p2682_p4 = pnand %p2680_p3, %p2677_p2 }
  0x2c   :  { %2685 = shalt.err (!%p2682_p4)
}
  0x2d   :  { %s2686_s5 = scalar_lea.vmem %s27_s25, 256  ;;  %p2691_p6 = scmp.lt.s32.totalorder %s27_s25, %s27_s25 }
  0x2e   :  { %p2687_p5 = scmp.ne.s32.totalorder %s27_s25, %s2686_s5  ;;  %p2692_p7 = scmp.lt.s32.totalorder %s2686_s5, %s2686_s5 }
  0x30   :  { %p2693_p8 = por %p2692_p7, %p2691_p6 }
  0x32   :  { %p2694_p9 = pnand %p2693_p8, %p2687_p5 }
  0x34   :  { %2697 = shalt.err (!%p2694_p9)
}
  0x35   :  { %32 = dma.hbm_to_vmem [thread:$0]  %s3487_s0, 256, %s27_s25, [#allocation7], %s2798_s29, %s2798_s29, %s2799_s30  }
  0x36   :  { %s2698_s23 = scalar_lea.hbm %s3489_s2, 256 }
  0x37   :  { %p2699_p10 = scmp.ne.s32.totalorder %s3489_s2, %s2698_s23  ;;  %p2702_p11 = scmp.lt.u32.totalorder %s2698_s23, %s3489_s2 }
  0x39   :  { %p2704_p12 = pnand %p2702_p11, %p2699_p10 }
  0x3b   :  { %2707 = shalt.err (!%p2704_p12)
}
  0x3c   :  { %s2708_s28 = scalar_lea.vmem %s2906_s27, 256  ;;  %p2713_p0 = scmp.lt.s32.totalorder %s2906_s27, %s2906_s27 }
  0x3d   :  { %p2709_p13 = scmp.ne.s32.totalorder %s2906_s27, %s2708_s28  ;;  %p2714_p1 = scmp.lt.s32.totalorder %s2708_s28, %s2708_s28 }
  0x3f   :  { %p2715_p2 = por %p2714_p1, %p2713_p0 }
  0x41   :  { %p2716_p3 = pnand %p2715_p2, %p2709_p13 }
  0x43   :  { %2719 = shalt.err (!%p2716_p3)
}
  0x44   :  { %56 = dma.hbm_to_vmem [thread:$0]  %s3489_s2, 256, %s2906_s27, [#allocation10], %s2798_s29, %s2798_s29, %s2799_s30  }
  0x45   :  { %s2802_s12 = smov [#allocation14]   ;;  %s2803_s14 = smov [#allocation15]  }
  0x46   :  { %s78_s13 = sshll.u32 %s2802_s12, 4  ;;  %s92_s15 = sshll.u32 %s2803_s14, 4  ;;  %s79_s13 = int_to_ptr.vmem [resolvable:$true] %s78_s13  ;;  %s2943_s15 = int_to_ptr.vmem [resolvable:$true] %s92_s15 }
  0x47   :  { %s2720_s5 = scalar_lea.hbm %s3493_s6, 1024 }
  0x48   :  { %p2721_p4 = scmp.ne.s32.totalorder %s3493_s6, %s2720_s5  ;;  %p2724_p5 = scmp.lt.u32.totalorder %s2720_s5, %s3493_s6 }
  0x4a   :  { %p2726_p6 = pnand %p2724_p5, %p2721_p4 }
  0x4c   :  { %2729 = shalt.err (!%p2726_p6)
}
  0x4d   :  { %s2730_s2 = scalar_lea.vmem %s79_s13, 1024  ;;  %p2735_p8 = scmp.lt.s32.totalorder %s79_s13, %s79_s13 }
  0x4e   :  { %p2731_p7 = scmp.ne.s32.totalorder %s79_s13, %s2730_s2  ;;  %p2736_p9 = scmp.lt.s32.totalorder %s2730_s2, %s2730_s2 }
  0x50   :  { %p2737_p10 = por %p2736_p9, %p2735_p8 }
  0x52   :  { %p2738_p11 = pnand %p2737_p10, %p2731_p7 }
  0x54   :  { %2741 = shalt.err (!%p2738_p11)
}
  0x55   :  { %84 = dma.hbm_to_vmem [thread:$0]  %s3493_s6, 1024, %s79_s13, [#allocation13], %s2798_s29, %s2798_s29, %s2799_s30  }
  0x56   :  { %s2742_s24 = scalar_lea.hbm %s3495_s8, 1024 }
  0x57   :  { %p2743_p12 = scmp.ne.s32.totalorder %s3495_s8, %s2742_s24  ;;  %p2746_p13 = scmp.lt.u32.totalorder %s2742_s24, %s3495_s8 }
  0x59   :  { %p2748_p0 = pnand %p2746_p13, %p2743_p12 }
  0x5b   :  { %2751 = shalt.err (!%p2748_p0)
}
  0x5c   :  { %s2752_s12 = scalar_lea.vmem %s2943_s15, 1024  ;;  %p2757_p2 = scmp.lt.s32.totalorder %s2943_s15, %s2943_s15 }
  0x5d   :  { %p2753_p1 = scmp.ne.s32.totalorder %s2943_s15, %s2752_s12  ;;  %p2758_p3 = scmp.lt.s32.totalorder %s2752_s12, %s2752_s12 }
  0x5f   :  { %p2759_p4 = por %p2758_p3, %p2757_p2 }
  0x61   :  { %p2760_p5 = pnand %p2759_p4, %p2753_p1 }
  0x63   :  { %2763 = shalt.err (!%p2760_p5)
}
  0x64   :  { %98 = dma.hbm_to_vmem [thread:$0]  %s3495_s8, 1024, %s2943_s15, [#allocation16], %s2798_s29, %s2798_s29, %s2799_s30  }
  0x65   :  { %2786 = dma.done.wait [#allocation7], 256  }
  0x66   :  { %2787 = vsyncadd [#allocation7], 4294967040 }
  0x67   :  { %2788 = dma.done.wait [#allocation10], 512  }
  0x68   :  { %2789 = vsyncadd [#allocation10], 4294966784 }
  0x69   :  { %2790 = dma.done.wait [#allocation13], 2048  }
  0x6a   :  { %2791 = vsyncadd [#allocation13], 4294965248 }
  0x6b   :  { %2792 = dma.done.wait [#allocation16], 1024  }
  0x6c   :  { %2793 = vsyncadd [#allocation16], 4294966272  ;;  %vm122_vm0 = vcmask 130048   ;;  %v2804_v0 = vmov 0   ;;  %v2805_v1 = vmov 0.0   ;;  %vm136_vm1 = vcmask 1041409  }
  0x6d   :  { %277 = vmatprep.mubr.bf16.mxu0 %v2804_v0  ;;  %307 = vmatprep.mubr.bf16.mxu1 %v2804_v0  ;;  %123 = vst.msk [vmem:[#allocation2] sm:$0xff] %vm122_vm0, %v2805_v1  ;;  %124 = vst.msk [vmem:[#allocation2 + $0x8] sm:$0xff] %vm122_vm0, %v2805_v1  ;;  %v2382_v2 = vld [vmem:[#allocation9 + $0x4] ss:$8 sps:$4 sm:$0xff]   ;;  %v2384_v3 = vld [vmem:[#allocation9] ss:$8 sps:$4 sm:$0xff]   ;;  %v213_v58 = vlaneseq }
  0x6e   :  { %125 = vst.msk [vmem:[#allocation2 + $0x10] sm:$0xff] %vm122_vm0, %v2805_v1  ;;  %126 = vst.msk [vmem:[#allocation2 + $0x18] sm:$0xff] %vm122_vm0, %v2805_v1  ;;  %2362 = vmatprep.subr.bf16.mxu1 %v2382_v2  ;;  %245 = vmatprep.subr.bf16.mxu0 %v2382_v2  ;;  %v2387_v4 = vld [vmem:[#allocation11 + $0x4] ss:$8 sps:$4 sm:$0xff]   ;;  %v131_v5 = vld [vmem:[#allocation6] sm:$0x1] }
  0x6f   :  { %127 = vst.msk [vmem:[#allocation2 + $0x20] sm:$0xff] %vm122_vm0, %v2805_v1  ;;  %128 = vst.msk [vmem:[#allocation2 + $0x28] sm:$0xff] %vm122_vm0, %v2805_v1  ;;  %vm139_vm2 = vcmask 123904   ;;  %2363 = vmatpush1.bf16.msra.mxu1 %v2384_v3  ;;  %246 = vmatpush1.bf16.msra.mxu0 %v2384_v3  ;;  %v132_v6 = vld [vmem:[#allocation6 + $0x8] sm:$0x1]  ;;  %v3098_v59 = vshrl.u32 %v213_v58, 7 }
  0x70   :  { %129 = vst.msk [vmem:[#allocation2 + $0x30] sm:$0xff] %vm122_vm0, %v2805_v1  ;;  %130 = vst.msk [vmem:[#allocation2 + $0x38] sm:$0xff] %vm122_vm0, %v2805_v1  ;;  %v141_v7 = vld [vmem:[#allocation6 + $0x1] sm:$0x1]  ;;  %v142_v8 = vld [vmem:[#allocation6 + $0x9] sm:$0x1]  ;;  %346 = vmatprep.subr.bf16.mxu1 %v2387_v4 }
  0x71   :  { %v135_v9 = vrot.slane %v132_v6, 7  ;;  %v145_v10 = vrot.slane %v142_v8, 7  ;;  %v181_v11 = vld [vmem:[#allocation6 + $0x6] sm:$0x1]  ;;  %v182_v12 = vld [vmem:[#allocation6 + $0xe] sm:$0x1] }
  0x72   :  { %v185_v13 = vrot.slane %v182_v12, 7  ;;  %v189_v14 = vld [vmem:[#allocation6 + $0x7] sm:$0x1]  ;;  %v190_v15 = vld [vmem:[#allocation6 + $0xf] sm:$0x1]  ;;  %v215_v60 = vsub.s32 0, %v3098_v59 }
  0x73   :  { %v137_v16 = vsel %vm136_vm1, %v135_v9, %v131_v5  ;;  %v146_v17 = vsel %vm136_vm1, %v145_v10, %v141_v7  ;;  %v193_v18 = vrot.slane %v190_v15, 7  ;;  %v149_v19 = vld [vmem:[#allocation6 + $0x2] sm:$0x1]  ;;  %v150_v20 = vld [vmem:[#allocation6 + $0xa] sm:$0x1]  ;;  %v219_v62 = vsub.s32 1, %v3098_v59 }
  0x74   :  { %140 = vst.msk [vmem:[#allocation2] sm:$0x3] %vm139_vm2, %v137_v16  ;;  %148 = vst.msk [vmem:[#allocation2 + $0x8] sm:$0x3] %vm139_vm2, %v146_v17  ;;  %v186_v21 = vsel %vm136_vm1, %v185_v13, %v181_v11  ;;  %v153_v22 = vrot.slane %v150_v20, 7  ;;  %vm483_vm3 = vcmask 523264  }
  0x75   :  { %v157_v23 = vld [vmem:[#allocation6 + $0x3] sm:$0x1]  ;;  %v158_v24 = vld [vmem:[#allocation6 + $0xb] sm:$0x1]  ;;  %188 = vst.msk [vmem:[#allocation2 + $0x30] sm:$0x3] %vm139_vm2, %v186_v21  ;;  %v194_v25 = vsel %vm136_vm1, %v193_v18, %v189_v14 }
  0x76   :  { %v161_v26 = vrot.slane %v158_v24, 7  ;;  %v3008_v27 = vld [vmem:[%s3491_s4 + $0x4] ss:$8 sps:$4 sm:$0xff]   ;;  %196 = vst.msk [vmem:[#allocation2 + $0x38] sm:$0x3] %vm139_vm2, %v194_v25  ;;  %v154_v28 = vsel %vm136_vm1, %v153_v22, %v149_v19  ;;  %vm562_vm4 = vcmask 261120  }
  0x77   :  { %v165_v29 = vld [vmem:[#allocation6 + $0x4] sm:$0x1]  ;;  %v166_v30 = vld [vmem:[#allocation6 + $0xc] sm:$0x1]  ;;  %156 = vst.msk [vmem:[#allocation2 + $0x10] sm:$0x3] %vm139_vm2, %v154_v28  ;;  %487 = vmatprep.subr.bf16.mxu0 %v3008_v27 }
  0x78   :  { %v162_v31 = vsel %vm136_vm1, %v161_v26, %v157_v23  ;;  %v169_v32 = vrot.slane %v166_v30, 7  ;;  %v173_v33 = vld [vmem:[#allocation6 + $0x5] sm:$0x1]  ;;  %v174_v34 = vld [vmem:[#allocation6 + $0xd] sm:$0x1]  ;;  %vm564_vm5 = vcmask 523520  }
  0x79   :  { %164 = vst.msk [vmem:[#allocation2 + $0x18] sm:$0x3] %vm139_vm2, %v162_v31  ;;  %v177_v35 = vrot.slane %v174_v34, 7  ;;  %v3020_v37 = vld [vmem:[%s3491_s4] ss:$8 sps:$4 sm:$0xff]   ;;  %vm2807_vm6 = vmmov 0  }
  0x7a   :  { %v170_v36 = vsel %vm136_vm1, %v169_v32, %v165_v29  ;;  %v3027_v39 = vld [vmem:[%s3491_s4 + $0x14] ss:$8 sps:$4 sm:$0xff]   ;;  %v2385_v40 = vld [vmem:[#allocation11] ss:$8 sps:$4 sm:$0xff]   ;;  %v3033_v46 = vld [vmem:[%s3491_s4 + $0x10] ss:$8 sps:$4 sm:$0xff]  }
  0x7b   :  { %172 = vst.msk [vmem:[#allocation2 + $0x20] sm:$0x3] %vm139_vm2, %v170_v36  ;;  %v178_v38 = vsel %vm136_vm1, %v177_v35, %v173_v33  ;;  %v197_v41 = vld [vmem:[#allocation2] sm:$0xff]  ;;  %v198_v42 = vld [vmem:[#allocation2 + $0x8] sm:$0xff]  ;;  %v3054_v53 = vld [vmem:[%s3491_s4 + $0x34] ss:$8 sps:$4 sm:$0xff]  }
  0x7c   :  { %180 = vst.msk [vmem:[#allocation2 + $0x28] sm:$0x3] %vm139_vm2, %v178_v38  ;;  %v205_v43 = vpack.c.bf16 %v198_v42, %v197_v41  ;;  %v203_v44 = vld [vmem:[#allocation2 + $0x30] sm:$0xff]  ;;  %v3039_v49 = vld [vmem:[%s3491_s4 + $0x24] ss:$8 sps:$4 sm:$0xff]   ;;  %s2808_s30 = smov [#allocation17]  }
  0x7d   :  { %v204_v45 = vld [vmem:[#allocation2 + $0x38] sm:$0xff]  ;;  %v3049_v51 = vld [vmem:[%s3491_s4 + $0x20] ss:$8 sps:$4 sm:$0xff]   ;;  %s2229_s14 = sshll.u32 %s2808_s30, 4  ;;  %vm2221_vm7 = vcmask 58368   ;;  %s2230_s14 = int_to_ptr.vmem [resolvable:$true] %s2229_s14 }
  0x7e   :  { %2243 = vmatmul.mubr.msk.bf16.vlgmr.msra.gmra.mrb[0].mxu0 %vm122_vm0, %v205_v43  ;;  %v208_v47 = vpack.c.bf16 %v204_v45, %v203_v44  ;;  %v199_v48 = vld [vmem:[#allocation2 + $0x10] sm:$0xff]  ;;  %v211_v61 = vld [vmem:[%s3490_s3] sm:$0x3]  ;;  %s2806_s3 = smov 64   ;;  %s2764_s15 = scalar_lea.vmem %s2230_s14, 32 }
  0x7f   :  { %287 = vmatprep.mubr.bf16.mxu0 %v2804_v0  ;;  %488 = vmatpush1.bf16.msra.mxu0 %v3020_v37  ;;  %v3062_v56 = vld [vmem:[%s3491_s4 + $0x30] ss:$8 sps:$4 sm:$0xff]   ;;  %v216_v63 = vrot.slane %v211_v61, %v215_v60  ;;  %v3109_v2 = vrot.slane %v211_v61, %v219_v62  ;;  %p2765_p6 = scmp.ne.s32.totalorder %s2230_s14, %s2764_s15  ;;  %p2769_p7 = scmp.lt.s32.totalorder %s2230_s14, %s2230_s14 }
  0x80   :  { %v200_v50 = vld [vmem:[#allocation2 + $0x18] sm:$0xff]  ;;  %2246 = vmatmul.mubr.msk.bf16.vlgmr.msra.gmra.mrb[0].mxu1 %vm122_vm0, %v208_v47  ;;  %489 = vmatprep.subr.bf16.mxu0 %v3027_v39  ;;  %p2770_p8 = scmp.lt.s32.totalorder %s2764_s15, %s2764_s15 }
  0x81   :  { %347 = vmatpush1.bf16.msra.mxu1 %v2385_v40  ;;  %378 = vmatprep.mubr.bf16.mxu1 %v2804_v0  ;;  %v206_v52 = vpack.c.bf16 %v200_v50, %v199_v48 }
  0x82   :  { %573 = vmatprep.subr.bf16.mxu1 %v3008_v27  ;;  %v201_v54 = vld [vmem:[#allocation2 + $0x20] sm:$0xff]  ;;  %p2771_p9 = por %p2770_p8, %p2769_p7 }
  0x83   :  { %490 = vmatpush1.bf16.msra.mxu0 %v3033_v46  ;;  %v202_v55 = vld [vmem:[#allocation2 + $0x28] sm:$0xff] }
  0x84   :  { %491 = vmatprep.subr.bf16.mxu0 %v3039_v49  ;;  %v207_v57 = vpack.c.bf16 %v202_v55, %v201_v54  ;;  %p2772_p10 = pnand %p2771_p9, %p2765_p6 }
  0x86   :  { %2244 = vmatmul.mubr.msk.bf16.gmra.mrb[4].mxu0 %vm122_vm0, %v206_v52 }
  0x87   :  { %297 = vmatprep.mubr.bf16.mxu0 %v2804_v0  ;;  %492 = vmatpush1.bf16.msra.mxu0 %v3049_v51 }
  0x88   :  { %2249 = vmatmul.mubr.msk.bf16.vlgmr.msra.gmra.mrb[4].mxu1 %vm122_vm0, %v205_v43  ;;  %493 = vmatprep.subr.bf16.mxu0 %v3054_v53 }
  0x89   :  { %388 = vmatprep.mubr.bf16.mxu1 %v2804_v0  ;;  %574 = vmatpush1.bf16.msra.mxu1 %v3020_v37 }
  0x8a   :  { %575 = vmatprep.subr.bf16.mxu1 %v3027_v39 }
  0x8b   :  { %494 = vmatpush1.bf16.msra.mxu0 %v3062_v56 }
  0x8c   :  { %657 = vmatprep.subr.bf16.mxu0 %v3008_v27 }
  0x8d   :  { %576 = vmatpush1.bf16.msra.mxu1 %v3033_v46 }
  0x8e   :  { %2245 = vmatmul.mubr.msk.bf16.gmra.mrb[8].mxu0 %vm122_vm0, %v207_v57  ;;  %577 = vmatprep.subr.bf16.mxu1 %v3039_v49 }
  0x8f   :  { %519 = vmatprep.mubr.bf16.mxu0 %v2804_v0 }
  0x90   :  { %2250 = vmatmul.mubr.msk.bf16.gmra.mrb[8].mxu1 %vm122_vm0, %v206_v52 }
  0x91   :  { %398 = vmatprep.mubr.bf16.mxu1 %v2804_v0  ;;  %578 = vmatpush1.bf16.msra.mxu1 %v3049_v51 }
  0x92   :  { %579 = vmatprep.subr.bf16.mxu1 %v3054_v53 }
  0x95   :  { %580 = vmatpush1.bf16.msra.mxu1 %v3062_v56 }
  0x96   :  { %520 = vmatmul.mubr.bf16.vlgmr.msra.gmra.mrb[12].mxu0 %v2804_v0  ;;  %741 = vmatprep.subr.bf16.mxu1 %v3008_v27 }
  0x97   :  { %658 = vmatpush1.bf16.msra.mxu0 %v3020_v37  ;;  %689 = vmatprep.mubr.bf16.mxu0 %v2804_v0 }
  0x98   :  { %2251 = vmatmul.mubr.msk.bf16.gmra.mrb[12].mxu1 %vm122_vm0, %v207_v57  ;;  %659 = vmatprep.subr.bf16.mxu0 %v3027_v39 }
  0x99   :  { %408 = vmatprep.mubr.bf16.mxu1 %v2804_v0 }
  0x9b   :  { %660 = vmatpush1.bf16.msra.mxu0 %v3033_v46 }
  0x9c   :  { %661 = vmatprep.subr.bf16.mxu0 %v3039_v49 }
  0x9f   :  { %662 = vmatpush1.bf16.msra.mxu0 %v3049_v51 }
  0xa0   :  { %2252 = vmatmul.mubr.msk.bf16.gmra.mrb[16].mxu1 %vm122_vm0, %v208_v47  ;;  %663 = vmatprep.subr.bf16.mxu0 %v3054_v53 }
  0xa1   :  { %605 = vmatprep.mubr.bf16.mxu1 %v2804_v0 }
  0xa3   :  { %664 = vmatpush1.bf16.msra.mxu0 %v3062_v56 }
  0xa4   :  { %825 = vmatprep.subr.bf16.mxu0 %v3008_v27 }
 0x151   :  { %v279_v3 = vpop.f32.mrb[0].mxu0 }
 0x152   :  { %v281_v4 = vpop.f32.mrb[1].mxu0 }
 0x153   :  { %v309_v5 = vpop.f32.mrb[0].mxu1  ;;  %v283_v6 = vpop.f32.mrb[2].mxu0 }
 0x154   :  { %v310_v7 = vadd.f32 %v309_v5, %v216_v63  ;;  %v311_v8 = vpop.f32.mrb[1].mxu1  ;;  %v284_v9 = vadd.f32 %v283_v6, %v216_v63  ;;  %v285_v10 = vpop.f32.mrb[3].mxu0 }
 0x155   :  { %v312_v11 = vadd.f32 %v311_v8, %v3109_v2  ;;  %v313_v12 = vpop.f32.mrb[2].mxu1  ;;  %v286_v13 = vadd.f32 %v285_v10, %v3109_v2 }
 0x156   :  { %v314_v14 = vadd.f32 %v313_v12, %v216_v63  ;;  %v315_v15 = vpop.f32.mrb[3].mxu1 }
 0x157   :  { %v316_v16 = vadd.f32 %v315_v15, %v3109_v2 }
 0x159   :  { %v289_v17 = vpop.f32.mrb[4].mxu0 }
 0x15a   :  { %v290_v18 = vadd.f32 %v289_v17, %v216_v63  ;;  %v291_v19 = vpop.f32.mrb[5].mxu0  ;;  %v280_v17 = vadd.f32 %v279_v3, %v216_v63 }
 0x15b   :  { %v380_v20 = vpop.f32.mrb[4].mxu1  ;;  %v292_v21 = vadd.f32 %v291_v19, %v3109_v2  ;;  %v293_v22 = vpop.f32.mrb[6].mxu0 }
 0x15c   :  { %v3115_v23 = vadd.f32 %v380_v20, %v314_v14  ;;  %v382_v24 = vpop.f32.mrb[5].mxu1  ;;  %v294_v25 = vadd.f32 %v293_v22, %v216_v63  ;;  %v295_v26 = vpop.f32.mrb[7].mxu0  ;;  %v282_v22 = vadd.f32 %v281_v4, %v3109_v2 }
 0x15d   :  { %v3117_v28 = vadd.f32 %v382_v24, %v316_v16  ;;  %v384_v29 = vpop.f32.mrb[6].mxu1  ;;  %v296_v30 = vadd.f32 %v295_v26, %v3109_v2 }
 0x15e   :  { %v3120_v31 = vadd.f32 %v384_v29, %v310_v7  ;;  %v386_v32 = vpop.f32.mrb[7].mxu1 }
 0x15f   :  { %v3122_v33 = vadd.f32 %v386_v32, %v312_v11 }
 0x161   :  { %v299_v34 = vpop.f32.mrb[8].mxu0 }
 0x162   :  { %v300_v35 = vadd.f32 %v299_v34, %v216_v63  ;;  %v301_v36 = vpop.f32.mrb[9].mxu0 }
 0x163   :  { %v390_v38 = vpop.f32.mrb[8].mxu1  ;;  %v302_v40 = vadd.f32 %v301_v36, %v3109_v2  ;;  %v303_v41 = vpop.f32.mrb[10].mxu0 }
 0x164   :  { %v392_v42 = vpop.f32.mrb[9].mxu1  ;;  %v304_v43 = vadd.f32 %v303_v41, %v216_v63  ;;  %v305_v44 = vpop.f32.mrb[11].mxu0 }
 0x165   :  { %v394_v45 = vpop.f32.mrb[10].mxu1  ;;  %v306_v47 = vadd.f32 %v305_v44, %v3109_v2 }
 0x166   :  { %v3126_v48 = vadd.f32 %v394_v45, %v300_v35  ;;  %v396_v50 = vpop.f32.mrb[11].mxu1  ;;  %v3128_v52 = vadd.f32 %v390_v38, %v304_v43 }
 0x167   :  { %v3130_v54 = vadd.f32 %v396_v50, %v302_v40  ;;  %v3132_v55 = vadd.f32 %v392_v42, %v306_v47 }
 0x169   :  { %v521_v57 = vpop.f32.mrb[12].mxu0 }
 0x16a   :  { %v523_v58 = vpop.f32.mrb[13].mxu0 }
 0x16b   :  { %v400_v61 = vpop.f32.mrb[12].mxu1  ;;  %v525_v5 = vpop.f32.mrb[14].mxu0 }
 0x16c   :  { %v3134_v6 = vadd.f32 %v400_v61, %v294_v25  ;;  %v402_v7 = vpop.f32.mrb[13].mxu1  ;;  %v526_v8 = vpop.f32.mrb[15].mxu0 }
 0x16d   :  { %v3136_v10 = vadd.f32 %v402_v7, %v296_v30  ;;  %v404_v11 = vpop.f32.mrb[14].mxu1 }
 0x16e   :  { %v3138_v12 = vadd.f32 %v404_v11, %v290_v18  ;;  %v406_v14 = vpop.f32.mrb[15].mxu1 }
 0x16f   :  { %v3140_v15 = vadd.f32 %v406_v14, %v292_v21 }
 0x173   :  { %v410_v16 = vpop.f32.mrb[16].mxu1 }
 0x174   :  { %v618_v19 = vadd.f32 %v410_v16, %v284_v9  ;;  %v412_v20 = vpop.f32.mrb[17].mxu1 }
 0x175   :  { %v619_v24 = vadd.f32 %v412_v20, %v286_v13  ;;  %v414_v26 = vpop.f32.mrb[18].mxu1 }
 0x176   :  { %v532_v25 = vadd.f32 %v414_v26, %v280_v17  ;;  %v416_v29 = vpop.f32.mrb[19].mxu1 }
 0x177   :  { %v533_v32 = vadd.f32 %v416_v29, %v282_v22 }
 0x178   :  { %v534_v34 = vadd.f32 %v532_v25, %v521_v57 }
 0x179   :  { %v535_v30 = vadd.f32 %v533_v32, %v523_v58 }
 0x17a   :  { %v2261_v35 = vmul.f32 -1.442695, %v534_v34 }
 0x17b   :  { %v2262_v2 = vmul.f32 -1.442695, %v535_v30 }
 0x17c   :  { %2440 = vpow2.f32 %v2261_v35 }
 0x17d   :  { %2442 = vtanh.f32 %v535_v30 }
 0x186   :  { %v2441_v18 = vpop.eup %2440 }
 0x187   :  { %v542_v36 = vadd.f32 1.0, %v2441_v18  ;;  %v2443_v21 = vpop.eup %2442 }
 0x189   :  { %2444 = vrcp.f32 %v542_v36 }
 0x18a   :  { %2446 = vpow2.f32 %v2262_v2 }
 0x193   :  { %v2445_v38 = vpop.eup %2444 }
 0x194   :  { %v550_v63 = vmul.f32 %v2445_v38, %v2443_v21  ;;  %v2447_v3 = vpop.eup %2446  ;;  %v549_v9 = vmul.f32 0.0, %v2445_v38 }
 0x195   :  { %v543_v4 = vadd.f32 1.0, %v2447_v3 }
 0x196   :  { %552 = vrot.lane.b32.xlu0 %v550_v63, %s2806_s3 }
 0x197   :  { %2448 = vrcp.f32 %v543_v4 }
 0x1a1   :  { %v2449_v41 = vpop.eup %2448 }
 0x208   :  { %v553_v13 = vpop.permute.xlu0 %552 }
 0x209   :  { %v555_v40 = vadd.f32 %v553_v13, %v549_v9 }
 0x20b   :  { %2450 = vtanh.f32 %v555_v40 }
 0x215   :  { %v2451_v42 = vpop.eup %2450 }
 0x216   :  { %v3144_v43 = vmul.f32 %v2451_v42, %v2449_v41 }
 0x218   :  { %v566_v44 = vpack.c.bf16 %v3144_v43, %v3144_v43 }
 0x21a   :  { %568 = vrot.lane.b32.xlu0 %v566_v44, %s2806_s3 }
 0x28c   :  { %v569_v45 = vpop.permute.xlu0 %568 }
 0x28d   :  { %2263 = vmatmul.mubr.msk.bf16.vlgmr.msra.gmra.mrb[20].mxu1 %vm483_vm3, %v569_v45 }
 0x28e   :  { %742 = vmatpush1.bf16.msra.mxu1 %v3020_v37  ;;  %773 = vmatprep.mubr.bf16.mxu1 %v2804_v0 }
 0x28f   :  { %743 = vmatprep.subr.bf16.mxu1 %v3027_v39 }
 0x292   :  { %744 = vmatpush1.bf16.msra.mxu1 %v3033_v46 }
 0x293   :  { %745 = vmatprep.subr.bf16.mxu1 %v3039_v49 }
 0x296   :  { %746 = vmatpush1.bf16.msra.mxu1 %v3049_v51 }
 0x297   :  { %747 = vmatprep.subr.bf16.mxu1 %v3054_v53 }
 0x29a   :  { %748 = vmatpush1.bf16.msra.mxu1 %v3062_v56 }
 0x29b   :  { %909 = vmatprep.subr.bf16.mxu1 %v3008_v27 }
 0x360   :  { %v607_v47 = vpop.f32.mrb[20].mxu1 }
 0x361   :  { %v620_v50 = vadd.f32 %v618_v19, %v607_v47  ;;  %v609_v57 = vpop.f32.mrb[21].mxu1 }
 0x362   :  { %v621_v58 = vadd.f32 %v619_v24, %v609_v57  ;;  %v611_v61 = vpop.f32.mrb[22].mxu1 }
 0x363   :  { %v2264_v5 = vmul.f32 -1.442695, %v620_v50  ;;  %v612_v7 = vpop.f32.mrb[23].mxu1 }
 0x364   :  { %v2265_v20 = vmul.f32 -1.442695, %v621_v58 }
 0x365   :  { %2452 = vpow2.f32 %v2264_v5 }
 0x366   :  { %2454 = vtanh.f32 %v621_v58 }
 0x36f   :  { %v2453_v8 = vpop.eup %2452 }
 0x370   :  { %v628_v11 = vadd.f32 1.0, %v2453_v8  ;;  %v2455_v14 = vpop.eup %2454 }
 0x372   :  { %2456 = vrcp.f32 %v628_v11 }
 0x373   :  { %2458 = vpow2.f32 %v2265_v20 }
 0x37c   :  { %v2457_v16 = vpop.eup %2456 }
 0x37d   :  { %v636_v17 = vmul.f32 %v2457_v16, %v2455_v14  ;;  %v2459_v22 = vpop.eup %2458  ;;  %v635_v19 = vmul.f32 %v2457_v16, %v555_v40 }
 0x37e   :  { %v629_v26 = vadd.f32 1.0, %v2459_v22 }
 0x37f   :  { %638 = vrot.lane.b32.xlu1 %v636_v17, %s2806_s3 }
 0x380   :  { %2460 = vrcp.f32 %v629_v26 }
 0x38a   :  { %v2461_v29 = vpop.eup %2460 }
 0x3f1   :  { %v639_v25 = vpop.permute.xlu1 %638 }
 0x3f2   :  { %v641_v24 = vadd.f32 %v639_v25, %v635_v19 }
 0x3f4   :  { %2462 = vtanh.f32 %v641_v24 }
 0x3fe   :  { %v2463_v32 = vpop.eup %2462 }
 0x3ff   :  { %v3160_v34 = vmul.f32 %v2463_v32, %v2461_v29 }
 0x401   :  { %v650_v30 = vpack.c.bf16 %v3160_v34, %v3160_v34 }
 0x403   :  { %652 = vrot.lane.b32.xlu1 %v650_v30, %s2806_s3 }
 0x475   :  { %v653_v35 = vpop.permute.xlu1 %652 }
 0x476   :  { %2266 = vmatmul.mubr.msk.bf16.vlgmr.msra.gmra.mrb[16].mxu0 %vm483_vm3, %v653_v35 }
 0x477   :  { %826 = vmatpush1.bf16.msra.mxu0 %v3020_v37  ;;  %857 = vmatprep.mubr.bf16.mxu0 %v2804_v0 }
 0x478   :  { %827 = vmatprep.subr.bf16.mxu0 %v3027_v39 }
 0x47b   :  { %828 = vmatpush1.bf16.msra.mxu0 %v3033_v46 }
 0x47c   :  { %829 = vmatprep.subr.bf16.mxu0 %v3039_v49 }
 0x47f   :  { %830 = vmatpush1.bf16.msra.mxu0 %v3049_v51 }
 0x480   :  { %831 = vmatprep.subr.bf16.mxu0 %v3054_v53 }
 0x483   :  { %832 = vmatpush1.bf16.msra.mxu0 %v3062_v56 }
 0x484   :  { %993 = vmatprep.subr.bf16.mxu0 %v3008_v27 }
 0x549   :  { %v691_v18 = vpop.f32.mrb[16].mxu0 }
 0x54a   :  { %v704_v36 = vadd.f32 %v3138_v12, %v691_v18  ;;  %v693_v21 = vpop.f32.mrb[17].mxu0 }
 0x54b   :  { %v705_v38 = vadd.f32 %v3140_v15, %v693_v21  ;;  %v695_v63 = vpop.f32.mrb[18].mxu0 }
 0x54c   :  { %v2267_v2 = vmul.f32 -1.442695, %v704_v36  ;;  %v696_v3 = vpop.f32.mrb[19].mxu0 }
 0x54d   :  { %v2268_v42 = vmul.f32 -1.442695, %v705_v38 }
 0x54e   :  { %2464 = vpow2.f32 %v2267_v2 }
 0x54f   :  { %2466 = vtanh.f32 %v705_v38 }
 0x558   :  { %v2465_v4 = vpop.eup %2464 }
 0x559   :  { %v712_v9 = vadd.f32 1.0, %v2465_v4  ;;  %v2467_v13 = vpop.eup %2466 }
 0x55b   :  { %2468 = vrcp.f32 %v712_v9 }
 0x55c   :  { %2470 = vpow2.f32 %v2268_v42 }
 0x565   :  { %v2469_v40 = vpop.eup %2468 }
 0x566   :  { %v720_v41 = vmul.f32 %v2469_v40, %v2467_v13  ;;  %v2471_v44 = vpop.eup %2470  ;;  %v719_v45 = vmul.f32 %v2469_v40, %v641_v24 }
 0x567   :  { %v713_v12 = vadd.f32 1.0, %v2471_v44 }
 0x568   :  { %722 = vrot.lane.b32.xlu0 %v720_v41, %s2806_s3 }
 0x569   :  { %2472 = vrcp.f32 %v713_v12 }
 0x573   :  { %v2473_v50 = vpop.eup %2472 }
 0x5da   :  { %v723_v47 = vpop.permute.xlu0 %722 }
 0x5db   :  { %v725_v15 = vadd.f32 %v723_v47, %v719_v45 }
 0x5dd   :  { %2474 = vtanh.f32 %v725_v15 }
 0x5e7   :  { %v2475_v57 = vpop.eup %2474 }
 0x5e8   :  { %v3178_v58 = vmul.f32 %v2475_v57, %v2473_v50 }
 0x5ea   :  { %v734_v61 = vpack.c.bf16 %v3178_v58, %v3178_v58 }
 0x5ec   :  { %736 = vrot.lane.b32.xlu1 %v734_v61, %s2806_s3 }
 0x65e   :  { %v737_v5 = vpop.permute.xlu1 %736 }
 0x65f   :  { %2269 = vmatmul.mubr.msk.bf16.vlgmr.msra.gmra.mrb[24].mxu1 %vm483_vm3, %v737_v5 }
 0x660   :  { %910 = vmatpush1.bf16.msra.mxu1 %v3020_v37  ;;  %941 = vmatprep.mubr.bf16.mxu1 %v2804_v0 }
 0x661   :  { %911 = vmatprep.subr.bf16.mxu1 %v3027_v39 }
 0x664   :  { %912 = vmatpush1.bf16.msra.mxu1 %v3033_v46 }
 0x665   :  { %913 = vmatprep.subr.bf16.mxu1 %v3039_v49 }
 0x668   :  { %914 = vmatpush1.bf16.msra.mxu1 %v3049_v51 }
 0x669   :  { %915 = vmatprep.subr.bf16.mxu1 %v3054_v53 }
 0x66c   :  { %916 = vmatpush1.bf16.msra.mxu1 %v3062_v56 }
 0x66d   :  { %1077 = vmatprep.subr.bf16.mxu1 %v3008_v27 }
 0x732   :  { %v775_v7 = vpop.f32.mrb[24].mxu1 }
 0x733   :  { %v788_v8 = vadd.f32 %v3134_v6, %v775_v7  ;;  %v777_v11 = vpop.f32.mrb[25].mxu1 }
 0x734   :  { %v789_v14 = vadd.f32 %v3136_v10, %v777_v11  ;;  %v779_v16 = vpop.f32.mrb[26].mxu1 }
 0x735   :  { %v2270_v17 = vmul.f32 -1.442695, %v788_v8  ;;  %v780_v20 = vpop.f32.mrb[27].mxu1 }
 0x736   :  { %v2271_v27 = vmul.f32 -1.442695, %v789_v14 }
 0x737   :  { %2476 = vpow2.f32 %v2270_v17 }
 0x738   :  { %2478 = vtanh.f32 %v789_v14 }
 0x741   :  { %v2477_v22 = vpop.eup %2476 }
 0x742   :  { %v796_v26 = vadd.f32 1.0, %v2477_v22  ;;  %v2479_v19 = vpop.eup %2478 }
 0x744   :  { %2480 = vrcp.f32 %v796_v26 }
 0x745   :  { %2482 = vpow2.f32 %v2271_v27 }
 0x74e   :  { %v2481_v25 = vpop.eup %2480 }
 0x74f   :  { %v804_v24 = vmul.f32 %v2481_v25, %v2479_v19  ;;  %v2483_v29 = vpop.eup %2482  ;;  %v803_v32 = vmul.f32 %v2481_v25, %v725_v15 }
 0x750   :  { %v797_v6 = vadd.f32 1.0, %v2483_v29 }
 0x751   :  { %806 = vrot.lane.b32.xlu0 %v804_v24, %s2806_s3 }
 0x752   :  { %2484 = vrcp.f32 %v797_v6 }
 0x75c   :  { %v2485_v35 = vpop.eup %2484 }
 0x7c3   :  { %v807_v30 = vpop.permute.xlu0 %806 }
 0x7c4   :  { %v809_v10 = vadd.f32 %v807_v30, %v803_v32 }
 0x7c6   :  { %2486 = vtanh.f32 %v809_v10 }
 0x7d0   :  { %v2487_v18 = vpop.eup %2486 }
 0x7d1   :  { %v3196_v36 = vmul.f32 %v2487_v18, %v2485_v35 }
 0x7d3   :  { %v818_v21 = vpack.c.bf16 %v3196_v36, %v3196_v36 }
 0x7d5   :  { %820 = vrot.lane.b32.xlu1 %v818_v21, %s2806_s3 }
 0x847   :  { %v821_v38 = vpop.permute.xlu1 %820 }
 0x848   :  { %2272 = vmatmul.mubr.msk.bf16.vlgmr.msra.gmra.mrb[20].mxu0 %vm483_vm3, %v821_v38 }
 0x849   :  { %994 = vmatpush1.bf16.msra.mxu0 %v3020_v37  ;;  %1025 = vmatprep.mubr.bf16.mxu0 %v2804_v0 }
 0x84a   :  { %995 = vmatprep.subr.bf16.mxu0 %v3027_v39 }
 0x84d   :  { %996 = vmatpush1.bf16.msra.mxu0 %v3033_v46 }
 0x84e   :  { %997 = vmatprep.subr.bf16.mxu0 %v3039_v49 }
 0x851   :  { %998 = vmatpush1.bf16.msra.mxu0 %v3049_v51 }
 0x852   :  { %999 = vmatprep.subr.bf16.mxu0 %v3054_v53 }
 0x855   :  { %1000 = vmatpush1.bf16.msra.mxu0 %v3062_v56 }
 0x91b   :  { %v859_v63 = vpop.f32.mrb[20].mxu0 }
 0x91c   :  { %v872_v2 = vadd.f32 %v3126_v48, %v859_v63  ;;  %v861_v3 = vpop.f32.mrb[21].mxu0 }
 0x91d   :  { %v873_v4 = vadd.f32 %v3130_v54, %v861_v3  ;;  %v863_v9 = vpop.f32.mrb[22].mxu0 }
 0x91e   :  { %v2273_v13 = vmul.f32 -1.442695, %v872_v2  ;;  %v864_v40 = vpop.f32.mrb[23].mxu0 }
 0x91f   :  { %v2274_v47 = vmul.f32 -1.442695, %v873_v4 }
 0x920   :  { %2488 = vpow2.f32 %v2273_v13 }
 0x921   :  { %2490 = vtanh.f32 %v873_v4 }
 0x92a   :  { %v2489_v41 = vpop.eup %2488 }
 0x92b   :  { %v880_v42 = vadd.f32 1.0, %v2489_v41  ;;  %v2491_v44 = vpop.eup %2490 }
 0x92d   :  { %2492 = vrcp.f32 %v880_v42 }
 0x92e   :  { %2494 = vpow2.f32 %v2274_v47 }
 0x937   :  { %v2493_v12 = vpop.eup %2492 }
 0x938   :  { %v888_v45 = vmul.f32 %v2493_v12, %v2491_v44  ;;  %v2495_v15 = vpop.eup %2494  ;;  %v887_v50 = vmul.f32 %v2493_v12, %v809_v10 }
 0x939   :  { %v881_v48 = vadd.f32 1.0, %v2495_v15 }
 0x93a   :  { %890 = vrot.lane.b32.xlu0 %v888_v45, %s2806_s3 }
 0x93b   :  { %2496 = vrcp.f32 %v881_v48 }
 0x945   :  { %v2497_v61 = vpop.eup %2496 }
 0x9ac   :  { %v891_v57 = vpop.permute.xlu0 %890 }
 0x9ad   :  { %v893_v54 = vadd.f32 %v891_v57, %v887_v50 }
 0x9af   :  { %2498 = vtanh.f32 %v893_v54 }
 0x9b9   :  { %v2499_v5 = vpop.eup %2498 }
 0x9ba   :  { %v3213_v7 = vmul.f32 %v2499_v5, %v2497_v61 }
 0x9bc   :  { %v902_v8 = vpack.c.bf16 %v3213_v7, %v3213_v7 }
 0x9be   :  { %904 = vrot.lane.b32.xlu1 %v902_v8, %s2806_s3 }
 0xa30   :  { %v905_v11 = vpop.permute.xlu1 %904 }
 0xa31   :  { %2275 = vmatmul.mubr.msk.bf16.vlgmr.msra.gmra.mrb[28].mxu1 %vm483_vm3, %v905_v11 }
 0xa32   :  { %1078 = vmatpush1.bf16.msra.mxu1 %v3020_v37  ;;  %1109 = vmatprep.mubr.bf16.mxu1 %v2804_v0 }
 0xa33   :  { %1079 = vmatprep.subr.bf16.mxu1 %v3027_v39 }
 0xa36   :  { %1080 = vmatpush1.bf16.msra.mxu1 %v3033_v46 }
 0xa37   :  { %1081 = vmatprep.subr.bf16.mxu1 %v3039_v49 }
 0xa3a   :  { %1082 = vmatpush1.bf16.msra.mxu1 %v3049_v51 }
 0xa3b   :  { %1083 = vmatprep.subr.bf16.mxu1 %v3054_v53 }
 0xa3e   :  { %1084 = vmatpush1.bf16.msra.mxu1 %v3062_v56 }
 0xb04   :  { %v943_v14 = vpop.f32.mrb[28].mxu1 }
 0xb05   :  { %v956_v16 = vadd.f32 %v3128_v52, %v943_v14  ;;  %v945_v17 = vpop.f32.mrb[29].mxu1 }
 0xb06   :  { %v957_v37 = vadd.f32 %v3132_v55, %v945_v17  ;;  %v947_v20 = vpop.f32.mrb[30].mxu1 }
 0xb07   :  { %v2276_v22 = vmul.f32 -1.442695, %v956_v16  ;;  %v948_v26 = vpop.f32.mrb[31].mxu1 }
 0xb08   :  { %v2277_v53 = vmul.f32 -1.442695, %v957_v37  ;;  %v2402_v26 = vld [vmem:[#allocation12 + $0x4] ss:$8 sps:$4 sm:$0xff]  }
 0xb09   :  { %2500 = vpow2.f32 %v2276_v22  ;;  %1238 = vmatprep.subr.bf16.mxu0 %v2402_v26 }
 0xb0a   :  { %2502 = vtanh.f32 %v957_v37 }
 0xb13   :  { %v2501_v39 = vpop.eup %2500 }
 0xb14   :  { %v964_v46 = vadd.f32 1.0, %v2501_v39  ;;  %v2503_v49 = vpop.eup %2502  ;;  %v2403_v39 = vld [vmem:[#allocation14] ss:$8 sps:$4 sm:$0xff]  }
 0xb16   :  { %2504 = vrcp.f32 %v964_v46  ;;  %v2408_v46 = vld [vmem:[#allocation12 + $0x14] ss:$8 sps:$4 sm:$0xff]  }
 0xb17   :  { %2506 = vpow2.f32 %v2277_v53 }
 0xb20   :  { %v2505_v51 = vpop.eup %2504 }
 0xb21   :  { %v972_v19 = vmul.f32 %v2505_v51, %v2503_v49  ;;  %v2507_v56 = vpop.eup %2506  ;;  %v971_v25 = vmul.f32 %v2505_v51, %v893_v54  ;;  %v2411_v49 = vld [vmem:[#allocation14 + $0x14] ss:$8 sps:$4 sm:$0xff]   ;;  %v2406_v51 = vld [vmem:[#allocation12 + $0x10] ss:$8 sps:$4 sm:$0xff]  }
 0xb22   :  { %v965_v52 = vadd.f32 1.0, %v2507_v56 }
 0xb23   :  { %974 = vrot.lane.b32.xlu0 %v972_v19, %s2806_s3  ;;  %v2409_v19 = vld [vmem:[#allocation14 + $0x10] ss:$8 sps:$4 sm:$0xff]  }
 0xb24   :  { %2508 = vrcp.f32 %v965_v52 }
 0xb2e   :  { %v2509_v27 = vpop.eup %2508 }
 0xb95   :  { %v975_v24 = vpop.permute.xlu0 %974 }
 0xb96   :  { %v977_v55 = vadd.f32 %v975_v24, %v971_v25 }
 0xb98   :  { %2510 = vtanh.f32 %v977_v55 }
 0xba2   :  { %v2511_v29 = vpop.eup %2510 }
 0xba3   :  { %v3230_v6 = vmul.f32 %v2511_v29, %v2509_v27  ;;  %v2414_v27 = vld [vmem:[#allocation12 + $0x24] ss:$8 sps:$4 sm:$0xff]   ;;  %v2415_v29 = vld [vmem:[#allocation14 + $0x20] ss:$8 sps:$4 sm:$0xff]  }
 0xba5   :  { %v986_v32 = vpack.c.bf16 %v3230_v6, %v3230_v6 }
 0xba7   :  { %988 = vrot.lane.b32.xlu1 %v986_v32, %s2806_s3 }
 0xc19   :  { %v989_v30 = vpop.permute.xlu1 %988 }
 0xc1a   :  { %2278 = vmatmul.mubr.msk.bf16.vlgmr.msra.gmra.mrb[24].mxu0 %vm483_vm3, %v989_v30  ;;  %v2417_v30 = vld [vmem:[#allocation14 + $0x24] ss:$8 sps:$4 sm:$0xff]  }
 0xc1b   :  { %1270 = vmatprep.mubr.bf16.mxu0 %v2804_v0 }
 0xced   :  { %v1027_v10 = vpop.f32.mrb[24].mxu0 }
 0xcee   :  { %v1040_v35 = vadd.f32 %v3120_v31, %v1027_v10  ;;  %v1029_v18 = vpop.f32.mrb[25].mxu0  ;;  %v2420_v10 = vld [vmem:[#allocation12 + $0x34] ss:$8 sps:$4 sm:$0xff]  }
 0xcef   :  { %v1041_v21 = vadd.f32 %v3122_v33, %v1029_v18  ;;  %v1031_v38 = vpop.f32.mrb[26].mxu0  ;;  %v2418_v18 = vld [vmem:[#allocation12 + $0x30] ss:$8 sps:$4 sm:$0xff]  }
 0xcf0   :  { %v2279_v63 = vmul.f32 -1.442695, %v1040_v35  ;;  %v1032_v2 = vpop.f32.mrb[27].mxu0  ;;  %v2423_v35 = vld [vmem:[#allocation14 + $0x34] ss:$8 sps:$4 sm:$0xff]  }
 0xcf1   :  { %v2280_v41 = vmul.f32 -1.442695, %v1041_v21  ;;  %v3263_v38 = vld [vmem:[#allocation15 + $0x4] ss:$8 sps:$4 sm:$0xff]  }
 0xcf2   :  { %2512 = vpow2.f32 %v2279_v63 }
 0xcf3   :  { %2514 = vtanh.f32 %v1041_v21  ;;  %v2421_v21 = vld [vmem:[#allocation14 + $0x30] ss:$8 sps:$4 sm:$0xff]  }
 0xcfc   :  { %v2513_v3 = vpop.eup %2512 }
 0xcfd   :  { %v1048_v4 = vadd.f32 1.0, %v2513_v3  ;;  %v2515_v9 = vpop.eup %2514 }
 0xcff   :  { %2516 = vrcp.f32 %v1048_v4 }
 0xd00   :  { %2518 = vpow2.f32 %v2280_v41 }
 0xd09   :  { %v2517_v13 = vpop.eup %2516 }
 0xd0a   :  { %v1056_v40 = vmul.f32 %v2517_v13, %v2515_v9  ;;  %v2519_v42 = vpop.eup %2518  ;;  %v1055_v44 = vmul.f32 %v2517_v13, %v977_v55  ;;  %v2412_v55 = vld [vmem:[#allocation12 + $0x20] ss:$8 sps:$4 sm:$0xff]  }
 0xd0b   :  { %v1049_v31 = vadd.f32 1.0, %v2519_v42  ;;  %v3278_v42 = vld [vmem:[#allocation15] ss:$8 sps:$4 sm:$0xff]  }
 0xd0c   :  { %1058 = vrot.lane.b32.xlu0 %v1056_v40, %s2806_s3 }
 0xd0d   :  { %2520 = vrcp.f32 %v1049_v31  ;;  %v3282_v31 = vld [vmem:[#allocation15 + $0x14] ss:$8 sps:$4 sm:$0xff]  }
 0xd17   :  { %v2521_v45 = vpop.eup %2520 }
 0xd7e   :  { %v1059_v12 = vpop.permute.xlu0 %1058 }
 0xd7f   :  { %v1061_v33 = vadd.f32 %v1059_v12, %v1055_v44  ;;  %v3288_v44 = vld [vmem:[#allocation15 + $0x10] ss:$8 sps:$4 sm:$0xff]   ;;  %v3292_v12 = vld [vmem:[#allocation15 + $0x24] ss:$8 sps:$4 sm:$0xff]  }
 0xd81   :  { %2522 = vtanh.f32 %v1061_v33 }
 0xd8b   :  { %v2523_v47 = vpop.eup %2522 }
 0xd8c   :  { %v1063_v15 = vmul.f32 %v2523_v47, %v2521_v45 }
 0xd8e   :  { %v1070_v48 = vpack.c.bf16 %v1063_v15, %v1063_v15 }
 0xd90   :  { %1072 = vrot.lane.b32.xlu1 %v1070_v48, %s2806_s3  ;;  %v3300_v48 = vld [vmem:[#allocation15 + $0x34] ss:$8 sps:$4 sm:$0xff]  }
 0xd94   :  { %559 = vrot.lane.b32.xlu1 %v3144_v43, %s2806_s3 }
 0xd98   :  { %1065 = vrot.lane.b32.xlu1 %v1063_v15, %s2806_s3  ;;  %v3298_v15 = vld [vmem:[#allocation15 + $0x20] ss:$8 sps:$4 sm:$0xff]  }
 0xd9c   :  { %729 = vrot.lane.b32.xlu1 %v3178_v58, %s2806_s3 }
 0xda0   :  { %897 = vrot.lane.b32.xlu1 %v3213_v7, %s2806_s3 }
 0xe02   :  { %v1073_v50 = vpop.permute.xlu1 %1072 }
 0xe03   :  { %2281 = vmatmul.mubr.msk.bf16.vlgmr.msra.gmra.mrb[32].mxu1 %vm483_vm3, %v1073_v50  ;;  %v3308_v50 = vld [vmem:[#allocation15 + $0x30] ss:$8 sps:$4 sm:$0xff]  }
 0xe04   :  { %1407 = vmatprep.mubr.bf16.mxu1 %v2804_v0 }
 0xe06   :  { %v560_v57 = vpop.permute.xlu1 %559 }
 0xe07   :  { %563 = vst.msk [vmem:[#allocation5] sm:$0xff] %vm562_vm4, %v560_v57 }
 0xe08   :  { %565 = vst.msk [vmem:[#allocation5 + $0x38] sm:$0xff] %vm564_vm5, %v560_v57 }
 0xe0a   :  { %v1066_v43 = vpop.permute.xlu1 %1065 }
 0xe0e   :  { %v730_v54 = vpop.permute.xlu1 %729 }
 0xe0f   :  { %732 = vst.msk [vmem:[#allocation5 + $0x10] sm:$0xff] %vm562_vm4, %v730_v54 }
 0xe10   :  { %733 = vst.msk [vmem:[#allocation5 + $0x28] sm:$0xff] %vm564_vm5, %v730_v54 }
 0xe12   :  { %v898_v13 = vpop.permute.xlu1 %897 }
 0xed6   :  { %v1111_v58 = vpop.f32.mrb[32].mxu1 }
 0xed7   :  { %v1124_v61 = vadd.f32 %v3115_v23, %v1111_v58  ;;  %v1113_v5 = vpop.f32.mrb[33].mxu1  ;;  %v2400_v23 = vld [vmem:[#allocation12] ss:$8 sps:$4 sm:$0xff]  }
 0xed8   :  { %v1125_v7 = vadd.f32 %v3117_v28, %v1113_v5  ;;  %v1115_v8 = vpop.f32.mrb[34].mxu1  ;;  %v2405_v28 = vld [vmem:[#allocation14 + $0x4] ss:$8 sps:$4 sm:$0xff]   ;;  %1239 = vmatpush1.bf16.msra.mxu0 %v2400_v23 }
 0xed9   :  { %v2282_v11 = vmul.f32 -1.442695, %v1124_v61  ;;  %v1116_v14 = vpop.f32.mrb[35].mxu1  ;;  %1375 = vmatprep.subr.bf16.mxu1 %v2405_v28  ;;  %1240 = vmatprep.subr.bf16.mxu0 %v2408_v46 }
 0xeda   :  { %1376 = vmatpush1.bf16.msra.mxu1 %v2403_v39  ;;  %v2283_v53 = vmul.f32 -1.442695, %v1125_v7 }
 0xedb   :  { %2524 = vpow2.f32 %v2282_v11  ;;  %1377 = vmatprep.subr.bf16.mxu1 %v2411_v49 }
 0xedc   :  { %2526 = vtanh.f32 %v1125_v7  ;;  %1241 = vmatpush1.bf16.msra.mxu0 %v2406_v51  ;;  %v1174_v7 = vld [vmem:[%s3494_s7] sm:$0x3] }
 0xedd   :  { %1242 = vmatprep.subr.bf16.mxu0 %v2414_v27  ;;  %v1179_v14 = vrot.slane %v1174_v7, %v215_v60 }
 0xede   :  { %1378 = vmatpush1.bf16.msra.mxu1 %v2409_v19 }
 0xedf   :  { %1379 = vmatprep.subr.bf16.mxu1 %v2417_v30 }
 0xee0   :  { %1243 = vmatpush1.bf16.msra.mxu0 %v2412_v55 }
 0xee1   :  { %1244 = vmatprep.subr.bf16.mxu0 %v2420_v10 }
 0xee2   :  { %1380 = vmatpush1.bf16.msra.mxu1 %v2415_v29 }
 0xee3   :  { %1381 = vmatprep.subr.bf16.mxu1 %v2423_v35 }
 0xee4   :  { %1245 = vmatpush1.bf16.msra.mxu0 %v2418_v18 }
 0xee5   :  { %v2525_v16 = vpop.eup %2524  ;;  %1512 = vmatprep.subr.bf16.mxu0 %v3263_v38 }
 0xee6   :  { %v1132_v17 = vadd.f32 1.0, %v2525_v16  ;;  %v2527_v37 = vpop.eup %2526  ;;  %1382 = vmatpush1.bf16.msra.mxu1 %v2421_v21 }
 0xee7   :  { %1590 = vmatprep.subr.bf16.mxu1 %v3263_v38 }
 0xee8   :  { %2528 = vrcp.f32 %v1132_v17 }
 0xee9   :  { %2530 = vpow2.f32 %v2283_v53 }
 0xef2   :  { %v2529_v20 = vpop.eup %2528 }
 0xef3   :  { %v1140_v22 = vmul.f32 %v2529_v20, %v2527_v37  ;;  %v2531_v56 = vpop.eup %2530  ;;  %v1139_v52 = vmul.f32 %v2529_v20, %v1061_v33  ;;  %v1183_v37 = vrot.slane %v1174_v7, %v219_v62 }
 0xef5   :  { %1142 = vrot.lane.b32.xlu0 %v1140_v22, %s2806_s3 }
 0xef9   :  { %645 = vrot.lane.b32.xlu0 %v3160_v34, %s2806_s3  ;;  %v1133_v34 = vadd.f32 1.0, %v2531_v56 }
 0xefb   :  { %2532 = vrcp.f32 %v1133_v34 }
 0xf05   :  { %v2533_v63 = vpop.eup %2532 }
 0xf67   :  { %v1143_v25 = vpop.permute.xlu0 %1142 }
 0xf68   :  { %v1145_v24 = vadd.f32 %v1143_v25, %v1139_v52 }
 0xf6a   :  { %2534 = vtanh.f32 %v1145_v24 }
 0xf6b   :  { %v646_v32 = vpop.permute.xlu0 %645 }
 0xf6c   :  { %648 = vst.msk [vmem:[#allocation5 + $0x8] sm:$0xff] %vm562_vm4, %v646_v32 }
 0xf6d   :  { %649 = vst.msk [vmem:[#allocation5 + $0x30] sm:$0xff] %vm564_vm5, %v646_v32  ;;  %1069 = vst.msk [vmem:[#allocation5 + $0x8] sm:$0xff] %vm564_vm5, %v1066_v43 }
 0xf6e   :  { %1068 = vst.msk [vmem:[#allocation5 + $0x30] sm:$0xff] %vm562_vm4, %v1066_v43 }
 0xf74   :  { %v2535_v2 = vpop.eup %2534  ;;  %v1155_v41 = vld [vmem:[#allocation5 + $0x8] sm:$0xff] }
 0xf75   :  { %v1147_v3 = vmul.f32 %v2535_v2, %v2533_v63  ;;  %v1160_v61 = vld [vmem:[#allocation5 + $0x30] sm:$0xff] }
 0xf77   :  { %1149 = vrot.lane.b32.xlu0 %v1147_v3, %s2806_s3 }
 0xf7b   :  { %813 = vrot.lane.b32.xlu0 %v3196_v36, %s2806_s3 }
 0xf7f   :  { %981 = vrot.lane.b32.xlu0 %v3230_v6, %s2806_s3 }
 0xfe9   :  { %v1150_v4 = vpop.permute.xlu0 %1149 }
 0xfea   :  { %1152 = vst.msk [vmem:[#allocation5 + $0x38] sm:$0xff] %vm562_vm4, %v1150_v4 }
 0xfeb   :  { %1153 = vst.msk [vmem:[#allocation5] sm:$0xff] %vm564_vm5, %v1150_v4 }
 0xfed   :  { %v814_v9 = vpop.permute.xlu0 %813 }
 0xfee   :  { %816 = vst.msk [vmem:[#allocation5 + $0x18] sm:$0xff] %vm562_vm4, %v814_v9 }
 0xfef   :  { %817 = vst.msk [vmem:[#allocation5 + $0x20] sm:$0xff] %vm564_vm5, %v814_v9  ;;  %901 = vst.msk [vmem:[#allocation5 + $0x18] sm:$0xff] %vm564_vm5, %v898_v13 }
 0xff0   :  { %900 = vst.msk [vmem:[#allocation5 + $0x20] sm:$0xff] %vm562_vm4, %v898_v13 }
 0xff1   :  { %v982_v40 = vpop.permute.xlu0 %981  ;;  %v1161_v58 = vld [vmem:[#allocation5 + $0x38] sm:$0xff] }
 0xff2   :  { %v1154_v36 = vld [vmem:[#allocation5] sm:$0xff]  ;;  %984 = vst.msk [vmem:[#allocation5 + $0x28] sm:$0xff] %vm562_vm4, %v982_v40  ;;  %v1165_v5 = vpack.c.bf16 %v1161_v58, %v1160_v61 }
 0xff3   :  { %985 = vst.msk [vmem:[#allocation5 + $0x10] sm:$0xff] %vm564_vm5, %v982_v40  ;;  %v1162_v6 = vpack.c.bf16 %v1155_v41, %v1154_v36 }
 0xff5   :  { %2292 = vmatmul.mubr.msk.bf16.vlgmr.msra.gmra.mrb[28].mxu0 %vm483_vm3, %v1162_v6  ;;  %2304 = vmatmul.mubr.msk.bf16.vlgmr.msra.gmra.mrb[36].mxu1 %vm483_vm3, %v1162_v6 }
 0xff6   :  { %1513 = vmatpush1.bf16.msra.mxu0 %v3278_v42  ;;  %1280 = vmatprep.mubr.bf16.mxu0 %v2804_v0  ;;  %v1157_v45 = vld [vmem:[#allocation5 + $0x18] sm:$0xff] }
 0xff7   :  { %1417 = vmatprep.mubr.bf16.mxu1 %v2804_v0  ;;  %1514 = vmatprep.subr.bf16.mxu0 %v3282_v31  ;;  %v1158_v43 = vld [vmem:[#allocation5 + $0x20] sm:$0xff] }
 0xff8   :  { %1591 = vmatpush1.bf16.msra.mxu1 %v3278_v42 }
 0xff9   :  { %1592 = vmatprep.subr.bf16.mxu1 %v3282_v31  ;;  %v1159_v57 = vld [vmem:[#allocation5 + $0x28] sm:$0xff] }
 0xffa   :  { %v1156_v33 = vld [vmem:[#allocation5 + $0x10] sm:$0xff]  ;;  %1515 = vmatpush1.bf16.msra.mxu0 %v3288_v44  ;;  %v1164_v54 = vpack.c.bf16 %v1159_v57, %v1158_v43 }
 0xffb   :  { %v1163_v47 = vpack.c.bf16 %v1157_v45, %v1156_v33  ;;  %1516 = vmatprep.subr.bf16.mxu0 %v3292_v12 }
 0xffc   :  { %1593 = vmatpush1.bf16.msra.mxu1 %v3288_v44 }
 0xffd   :  { %2293 = vmatmul.mubr.msk.bf16.gmra.mrb[32].mxu0 %vm483_vm3, %v1163_v47  ;;  %2305 = vmatmul.mubr.msk.bf16.gmra.mrb[40].mxu1 %vm483_vm3, %v1163_v47 }
 0xffe   :  { %1290 = vmatprep.mubr.bf16.mxu0 %v2804_v0  ;;  %1427 = vmatprep.mubr.bf16.mxu1 %v2804_v0 }
 0xfff   :  { %1517 = vmatpush1.bf16.msra.mxu0 %v3298_v15  ;;  %1594 = vmatprep.subr.bf16.mxu1 %v3292_v12 }
0x1000   :  { %1518 = vmatprep.subr.bf16.mxu0 %v3300_v48  ;;  %1595 = vmatpush1.bf16.msra.mxu1 %v3298_v15 }
0x1001   :  { %1596 = vmatprep.subr.bf16.mxu1 %v3300_v48 }
0x1003   :  { %1519 = vmatpush1.bf16.msra.mxu0 %v3308_v50 }
0x1004   :  { %1597 = vmatpush1.bf16.msra.mxu1 %v3308_v50  ;;  %1668 = vmatprep.subr.bf16.mxu0 %v3263_v38 }
0x1005   :  { %2294 = vmatmul.mubr.msk.bf16.gmra.mrb[36].mxu0 %vm483_vm3, %v1164_v54  ;;  %2306 = vmatmul.mubr.msk.bf16.gmra.mrb[44].mxu1 %vm483_vm3, %v1164_v54 }
0x1006   :  { %1300 = vmatprep.mubr.bf16.mxu0 %v2804_v0  ;;  %1437 = vmatprep.mubr.bf16.mxu1 %v2804_v0 }
0x1007   :  { %1746 = vmatprep.subr.bf16.mxu1 %v3263_v38 }
0x100d   :  { %2295 = vmatmul.mubr.msk.bf16.gmra.mrb[40].mxu0 %vm483_vm3, %v1165_v5  ;;  %2307 = vmatmul.mubr.msk.bf16.gmra.mrb[48].mxu1 %vm483_vm3, %v1165_v5 }
0x100e   :  { %1544 = vmatprep.mubr.bf16.mxu0 %v2804_v0  ;;  %1622 = vmatprep.mubr.bf16.mxu1 %v2804_v0 }
0x1015   :  { %1545 = vmatmul.mubr.bf16.vlgmr.msra.gmra.mrb[44].mxu0 %v2804_v0 }
0x1016   :  { %1669 = vmatpush1.bf16.msra.mxu0 %v3278_v42  ;;  %1700 = vmatprep.mubr.bf16.mxu0 %v2804_v0 }
0x1017   :  { %1670 = vmatprep.subr.bf16.mxu0 %v3282_v31 }
0x101a   :  { %1671 = vmatpush1.bf16.msra.mxu0 %v3288_v44 }
0x101b   :  { %1672 = vmatprep.subr.bf16.mxu0 %v3292_v12 }
0x101e   :  { %1673 = vmatpush1.bf16.msra.mxu0 %v3298_v15 }
0x101f   :  { %1674 = vmatprep.subr.bf16.mxu0 %v3300_v48 }
0x1022   :  { %1675 = vmatpush1.bf16.msra.mxu0 %v3308_v50 }
0x1023   :  { %1824 = vmatprep.subr.bf16.mxu0 %v3263_v38 }
0x10c8   :  { %v1272_v8 = vpop.f32.mrb[28].mxu0  ;;  %v3339_v11 = vpop.f32.mrb[36].mxu1 }
0x10c9   :  { %v1274_v16 = vpop.f32.mrb[29].mxu0  ;;  %v1411_v17 = vpop.f32.mrb[37].mxu1  ;;  %v1273_v47 = vadd.f32 %v1272_v8, %v1179_v14 }
0x10ca   :  { %v1276_v20 = vpop.f32.mrb[30].mxu0  ;;  %v1413_v22 = vpop.f32.mrb[38].mxu1  ;;  %v1275_v61 = vadd.f32 %v1274_v16, %v1183_v37 }
0x10cb   :  { %v1277_v23 = vadd.f32 %v1276_v20, %v1179_v14  ;;  %v1278_v26 = vpop.f32.mrb[31].mxu0  ;;  %v1415_v39 = vpop.f32.mrb[39].mxu1 }
0x10cc   :  { %v1279_v28 = vadd.f32 %v1278_v26, %v1183_v37 }
0x10d0   :  { %v1282_v46 = vpop.f32.mrb[32].mxu0  ;;  %v1419_v49 = vpop.f32.mrb[40].mxu1 }
0x10d1   :  { %v1283_v51 = vadd.f32 %v1282_v46, %v1179_v14  ;;  %v1284_v19 = vpop.f32.mrb[33].mxu0  ;;  %v1421_v53 = vpop.f32.mrb[41].mxu1 }
0x10d2   :  { %v1285_v56 = vadd.f32 %v1284_v19, %v1183_v37  ;;  %v1286_v34 = vpop.f32.mrb[34].mxu0  ;;  %v1423_v52 = vpop.f32.mrb[42].mxu1 }
0x10d3   :  { %v1287_v60 = vadd.f32 %v1286_v34, %v1179_v14  ;;  %v1288_v25 = vpop.f32.mrb[35].mxu0  ;;  %v1425_v24 = vpop.f32.mrb[43].mxu1 }
0x10d4   :  { %v1289_v55 = vadd.f32 %v1288_v25, %v1183_v37 }
0x10d8   :  { %v1292_v59 = vpop.f32.mrb[36].mxu0  ;;  %v1429_v62 = vpop.f32.mrb[44].mxu1 }
0x10d9   :  { %v1293_v27 = vadd.f32 %v1292_v59, %v1179_v14  ;;  %v3345_v29 = vadd.f32 %v1429_v62, %v1287_v60  ;;  %v1294_v32 = vpop.f32.mrb[37].mxu0  ;;  %v1431_v30 = vpop.f32.mrb[45].mxu1 }
0x10da   :  { %v1295_v10 = vadd.f32 %v1294_v32, %v1183_v37  ;;  %v3347_v35 = vadd.f32 %v1431_v30, %v1289_v55  ;;  %v1296_v18 = vpop.f32.mrb[38].mxu0  ;;  %v1433_v21 = vpop.f32.mrb[46].mxu1 }
0x10db   :  { %v1297_v63 = vadd.f32 %v1296_v18, %v1179_v14  ;;  %v3349_v2 = vadd.f32 %v1433_v21, %v1283_v51  ;;  %v1298_v3 = vpop.f32.mrb[39].mxu0  ;;  %v1435_v4 = vpop.f32.mrb[47].mxu1  ;;  %v3351_v9 = vadd.f32 %v1423_v52, %v1293_v27 }
0x10dc   :  { %v1299_v13 = vadd.f32 %v1298_v3, %v1183_v37  ;;  %v3353_v40 = vadd.f32 %v1435_v4, %v1285_v56  ;;  %v3355_v36 = vadd.f32 %v1425_v24, %v1295_v10 }
0x10dd   :  { %v3357_v41 = vadd.f32 %v1419_v49, %v1297_v63 }
0x10de   :  { %v3359_v6 = vadd.f32 %v1421_v53, %v1299_v13 }
0x10e0   :  { %v1302_v33 = vpop.f32.mrb[40].mxu0  ;;  %v1439_v45 = vpop.f32.mrb[48].mxu1 }
0x10e1   :  { %v1303_v57 = vadd.f32 %v1302_v33, %v1179_v14  ;;  %v1635_v43 = vadd.f32 %v1439_v45, %v1277_v23  ;;  %v1304_v54 = vpop.f32.mrb[41].mxu0  ;;  %v1441_v58 = vpop.f32.mrb[49].mxu1 }
0x10e2   :  { %v1305_v5 = vadd.f32 %v1304_v54, %v1183_v37  ;;  %v1636_v7 = vadd.f32 %v1441_v58, %v1279_v28  ;;  %v1306_v20 = vpop.f32.mrb[42].mxu0  ;;  %v1443_v26 = vpop.f32.mrb[50].mxu1 }
0x10e3   :  { %v1307_v46 = vadd.f32 %v1306_v20, %v1179_v14  ;;  %v1557_v51 = vadd.f32 %v1443_v26, %v1273_v47  ;;  %v1308_v19 = vpop.f32.mrb[43].mxu0  ;;  %v1445_v56 = vpop.f32.mrb[51].mxu1  ;;  %v3361_v49 = vadd.f32 %v1413_v22, %v1303_v57 }
0x10e4   :  { %v1309_v53 = vadd.f32 %v1308_v19, %v1183_v37  ;;  %v1558_v34 = vadd.f32 %v1445_v56, %v1275_v61  ;;  %v3363_v52 = vadd.f32 %v1415_v39, %v1305_v5 }
0x10e5   :  { %v3366_v8 = vadd.f32 %v3339_v11, %v1307_v46 }
0x10e6   :  { %v3368_v23 = vadd.f32 %v1411_v17, %v1309_v53 }
0x10e8   :  { %v1546_v16 = vpop.f32.mrb[44].mxu0 }
0x10e9   :  { %v1559_v60 = vadd.f32 %v1557_v51, %v1546_v16  ;;  %v1548_v28 = vpop.f32.mrb[45].mxu0 }
0x10ea   :  { %v1560_v25 = vadd.f32 %v1558_v34, %v1548_v28  ;;  %v1550_v24 = vpop.f32.mrb[46].mxu0 }
0x10eb   :  { %v2316_v14 = vmul.f32 -1.442695, %v1559_v60  ;;  %v1551_v55 = vpop.f32.mrb[47].mxu0 }
0x10ec   :  { %v2317_v11 = vmul.f32 -1.442695, %v1560_v25 }
0x10ed   :  { %2536 = vpow2.f32 %v2316_v14 }
0x10ee   :  { %2538 = vtanh.f32 %v1560_v25 }
0x10f7   :  { %v2537_v59 = vpop.eup %2536 }
0x10f8   :  { %v1567_v22 = vadd.f32 1.0, %v2537_v59  ;;  %v2539_v37 = vpop.eup %2538 }
0x10fa   :  { %2540 = vrcp.f32 %v1567_v22 }
0x10fb   :  { %2542 = vpow2.f32 %v2317_v11 }
0x1104   :  { %v2541_v39 = vpop.eup %2540 }
0x1105   :  { %v1575_v62 = vmul.f32 %v2541_v39, %v2539_v37  ;;  %v2543_v17 = vpop.eup %2542  ;;  %v1574_v32 = vmul.f32 0.0, %v2541_v39 }
0x1106   :  { %v1568_v27 = vadd.f32 1.0, %v2543_v17 }
0x1107   :  { %1577 = vrot.lane.b32.xlu1 %v1575_v62, %s2806_s3 }
0x1108   :  { %2544 = vrcp.f32 %v1568_v27 }
0x1112   :  { %v2545_v18 = vpop.eup %2544 }
0x1179   :  { %v1578_v30 = vpop.permute.xlu1 %1577 }
0x117a   :  { %v1580_v10 = vadd.f32 %v1578_v30, %v1574_v32 }
0x117c   :  { %2546 = vtanh.f32 %v1580_v10 }
0x1186   :  { %v2547_v21 = vpop.eup %2546 }
0x1187   :  { %v3371_v63 = vmul.f32 %v2547_v21, %v2545_v18 }
0x1189   :  { %v1583_v3 = vpack.c.bf16 %v3371_v63, %v3371_v63 }
0x118b   :  { %1585 = vrot.lane.b32.xlu0 %v1583_v3, %s2806_s3 }
0x11fd   :  { %v1586_v4 = vpop.permute.xlu0 %1585 }
0x11fe   :  { %2318 = vmatmul.mubr.msk.bf16.vlgmr.msra.gmra.mrb[52].mxu1 %vm483_vm3, %v1586_v4 }
0x11ff   :  { %1747 = vmatpush1.bf16.msra.mxu1 %v3278_v42  ;;  %1778 = vmatprep.mubr.bf16.mxu1 %v2804_v0 }
0x1200   :  { %1748 = vmatprep.subr.bf16.mxu1 %v3282_v31 }
0x1203   :  { %1749 = vmatpush1.bf16.msra.mxu1 %v3288_v44 }
0x1204   :  { %1750 = vmatprep.subr.bf16.mxu1 %v3292_v12 }
0x1207   :  { %1751 = vmatpush1.bf16.msra.mxu1 %v3298_v15 }
0x1208   :  { %1752 = vmatprep.subr.bf16.mxu1 %v3300_v48 }
0x120b   :  { %1753 = vmatpush1.bf16.msra.mxu1 %v3308_v50 }
0x120c   :  { %1902 = vmatprep.subr.bf16.mxu1 %v3263_v38 }
0x12d1   :  { %v1624_v13 = vpop.f32.mrb[52].mxu1 }
0x12d2   :  { %v1637_v33 = vadd.f32 %v1635_v43, %v1624_v13  ;;  %v1626_v45 = vpop.f32.mrb[53].mxu1 }
0x12d3   :  { %v1638_v47 = vadd.f32 %v1636_v7, %v1626_v45  ;;  %v1628_v57 = vpop.f32.mrb[54].mxu1 }
0x12d4   :  { %v2319_v54 = vmul.f32 -1.442695, %v1637_v33  ;;  %v1629_v58 = vpop.f32.mrb[55].mxu1 }
0x12d5   :  { %v2320_v51 = vmul.f32 -1.442695, %v1638_v47 }
0x12d6   :  { %2548 = vpow2.f32 %v2319_v54 }
0x12d7   :  { %2550 = vtanh.f32 %v1638_v47 }
0x12e0   :  { %v2549_v61 = vpop.eup %2548 }
0x12e1   :  { %v1645_v5 = vadd.f32 1.0, %v2549_v61  ;;  %v2551_v20 = vpop.eup %2550 }
0x12e3   :  { %2552 = vrcp.f32 %v1645_v5 }
0x12e4   :  { %2554 = vpow2.f32 %v2320_v51 }
0x12ed   :  { %v2553_v26 = vpop.eup %2552 }
0x12ee   :  { %v1653_v46 = vmul.f32 %v2553_v26, %v2551_v20  ;;  %v2555_v19 = vpop.eup %2554  ;;  %v1652_v43 = vmul.f32 %v2553_v26, %v1580_v10 }
0x12ef   :  { %v1646_v56 = vadd.f32 1.0, %v2555_v19 }
0x12f0   :  { %1655 = vrot.lane.b32.xlu1 %v1653_v46, %s2806_s3 }
0x12f1   :  { %2556 = vrcp.f32 %v1646_v56 }
0x12fb   :  { %v2557_v34 = vpop.eup %2556 }
0x1362   :  { %v1656_v53 = vpop.permute.xlu1 %1655 }
0x1363   :  { %v1658_v7 = vadd.f32 %v1656_v53, %v1652_v43 }
0x1365   :  { %2558 = vtanh.f32 %v1658_v7 }
0x136f   :  { %v2559_v16 = vpop.eup %2558 }
0x1370   :  { %v1660_v60 = vmul.f32 %v2559_v16, %v2557_v34 }
0x1372   :  { %v1661_v28 = vpack.c.bf16 %v1660_v60, %v1660_v60 }
0x1374   :  { %1663 = vrot.lane.b32.xlu0 %v1661_v28, %s2806_s3 }
0x13e6   :  { %v1664_v25 = vpop.permute.xlu0 %1663 }
0x13e7   :  { %2321 = vmatmul.mubr.msk.bf16.vlgmr.msra.gmra.mrb[48].mxu0 %vm483_vm3, %v1664_v25 }
0x13e8   :  { %1825 = vmatpush1.bf16.msra.mxu0 %v3278_v42  ;;  %1856 = vmatprep.mubr.bf16.mxu0 %v2804_v0 }
0x13e9   :  { %1826 = vmatprep.subr.bf16.mxu0 %v3282_v31 }
0x13ec   :  { %1827 = vmatpush1.bf16.msra.mxu0 %v3288_v44 }
0x13ed   :  { %1828 = vmatprep.subr.bf16.mxu0 %v3292_v12 }
0x13f0   :  { %1829 = vmatpush1.bf16.msra.mxu0 %v3298_v15 }
0x13f1   :  { %1830 = vmatprep.subr.bf16.mxu0 %v3300_v48 }
0x13f4   :  { %1831 = vmatpush1.bf16.msra.mxu0 %v3308_v50 }
0x13f5   :  { %1980 = vmatprep.subr.bf16.mxu0 %v3263_v38 }
0x14ba   :  { %v1702_v24 = vpop.f32.mrb[48].mxu0 }
0x14bb   :  { %v1715_v14 = vadd.f32 %v3349_v2, %v1702_v24  ;;  %v1704_v55 = vpop.f32.mrb[49].mxu0 }
0x14bc   :  { %v1716_v59 = vadd.f32 %v3353_v40, %v1704_v55  ;;  %v1706_v22 = vpop.f32.mrb[50].mxu0 }
0x14bd   :  { %v2322_v37 = vmul.f32 -1.442695, %v1715_v14  ;;  %v1707_v39 = vpop.f32.mrb[51].mxu0 }
0x14be   :  { %v2323_v30 = vmul.f32 -1.442695, %v1716_v59 }
0x14bf   :  { %2560 = vpow2.f32 %v2322_v37 }
0x14c0   :  { %2562 = vtanh.f32 %v1716_v59 }
0x14c9   :  { %v2561_v62 = vpop.eup %2560 }
0x14ca   :  { %v1723_v11 = vadd.f32 1.0, %v2561_v62  ;;  %v2563_v17 = vpop.eup %2562 }
0x14cc   :  { %2564 = vrcp.f32 %v1723_v11 }
0x14cd   :  { %2566 = vpow2.f32 %v2323_v30 }
0x14d6   :  { %v2565_v27 = vpop.eup %2564 }
0x14d7   :  { %v1731_v32 = vmul.f32 %v2565_v27, %v2563_v17  ;;  %v2567_v10 = vpop.eup %2566  ;;  %v1730_v18 = vmul.f32 %v2565_v27, %v1658_v7 }
0x14d8   :  { %v1724_v2 = vadd.f32 1.0, %v2567_v10 }
0x14d9   :  { %1733 = vrot.lane.b32.xlu1 %v1731_v32, %s2806_s3 }
0x14da   :  { %2568 = vrcp.f32 %v1724_v2 }
0x14e4   :  { %v2569_v3 = vpop.eup %2568 }
0x154b   :  { %v1734_v21 = vpop.permute.xlu1 %1733 }
0x154c   :  { %v1736_v40 = vadd.f32 %v1734_v21, %v1730_v18 }
0x154e   :  { %2570 = vtanh.f32 %v1736_v40 }
0x1558   :  { %v2571_v4 = vpop.eup %2570 }
0x1559   :  { %v1738_v13 = vmul.f32 %v2571_v4, %v2569_v3 }
0x155b   :  { %v1739_v33 = vpack.c.bf16 %v1738_v13, %v1738_v13 }
0x155d   :  { %1741 = vrot.lane.b32.xlu0 %v1739_v33, %s2806_s3 }
0x15cf   :  { %v1742_v45 = vpop.permute.xlu0 %1741 }
0x15d0   :  { %2324 = vmatmul.mubr.msk.bf16.vlgmr.msra.gmra.mrb[56].mxu1 %vm483_vm3, %v1742_v45 }
0x15d1   :  { %1903 = vmatpush1.bf16.msra.mxu1 %v3278_v42  ;;  %1934 = vmatprep.mubr.bf16.mxu1 %v2804_v0 }
0x15d2   :  { %1904 = vmatprep.subr.bf16.mxu1 %v3282_v31 }
0x15d5   :  { %1905 = vmatpush1.bf16.msra.mxu1 %v3288_v44 }
0x15d6   :  { %1906 = vmatprep.subr.bf16.mxu1 %v3292_v12 }
0x15d9   :  { %1907 = vmatpush1.bf16.msra.mxu1 %v3298_v15 }
0x15da   :  { %1908 = vmatprep.subr.bf16.mxu1 %v3300_v48 }
0x15dd   :  { %1909 = vmatpush1.bf16.msra.mxu1 %v3308_v50 }
0x15de   :  { %2058 = vmatprep.subr.bf16.mxu1 %v3263_v38 }
0x16a3   :  { %v1780_v47 = vpop.f32.mrb[56].mxu1 }
0x16a4   :  { %v1793_v57 = vadd.f32 %v3345_v29, %v1780_v47  ;;  %v1782_v54 = vpop.f32.mrb[57].mxu1 }
0x16a5   :  { %v1794_v58 = vadd.f32 %v3347_v35, %v1782_v54  ;;  %v1784_v61 = vpop.f32.mrb[58].mxu1 }
0x16a6   :  { %v2325_v5 = vmul.f32 -1.442695, %v1793_v57  ;;  %v1785_v20 = vpop.f32.mrb[59].mxu1 }
0x16a7   :  { %v2326_v38 = vmul.f32 -1.442695, %v1794_v58 }
0x16a8   :  { %2572 = vpow2.f32 %v2325_v5 }
0x16a9   :  { %2574 = vtanh.f32 %v1794_v58 }
0x16b2   :  { %v2573_v26 = vpop.eup %2572 }
0x16b3   :  { %v1801_v46 = vadd.f32 1.0, %v2573_v26  ;;  %v2575_v51 = vpop.eup %2574 }
0x16b5   :  { %2576 = vrcp.f32 %v1801_v46 }
0x16b6   :  { %2578 = vpow2.f32 %v2326_v38 }
0x16bf   :  { %v2577_v19 = vpop.eup %2576 }
0x16c0   :  { %v1809_v56 = vmul.f32 %v2577_v19, %v2575_v51  ;;  %v2579_v43 = vpop.eup %2578  ;;  %v1808_v53 = vmul.f32 %v2577_v19, %v1736_v40 }
0x16c1   :  { %v1802_v29 = vadd.f32 1.0, %v2579_v43 }
0x16c2   :  { %1811 = vrot.lane.b32.xlu1 %v1809_v56, %s2806_s3 }
0x16c3   :  { %2580 = vrcp.f32 %v1802_v29 }
0x16cd   :  { %v2581_v34 = vpop.eup %2580 }
0x1734   :  { %v1812_v7 = vpop.permute.xlu1 %1811 }
0x1735   :  { %v1814_v35 = vadd.f32 %v1812_v7, %v1808_v53 }
0x1737   :  { %2582 = vtanh.f32 %v1814_v35 }
0x1741   :  { %v2583_v16 = vpop.eup %2582 }
0x1742   :  { %v1816_v60 = vmul.f32 %v2583_v16, %v2581_v34 }
0x1744   :  { %v1817_v28 = vpack.c.bf16 %v1816_v60, %v1816_v60 }
0x1746   :  { %1819 = vrot.lane.b32.xlu0 %v1817_v28, %s2806_s3 }
0x17b8   :  { %v1820_v25 = vpop.permute.xlu0 %1819 }
0x17b9   :  { %2327 = vmatmul.mubr.msk.bf16.vlgmr.msra.gmra.mrb[52].mxu0 %vm483_vm3, %v1820_v25 }
0x17ba   :  { %1981 = vmatpush1.bf16.msra.mxu0 %v3278_v42  ;;  %2012 = vmatprep.mubr.bf16.mxu0 %v2804_v0 }
0x17bb   :  { %1982 = vmatprep.subr.bf16.mxu0 %v3282_v31 }
0x17be   :  { %1983 = vmatpush1.bf16.msra.mxu0 %v3288_v44 }
0x17bf   :  { %1984 = vmatprep.subr.bf16.mxu0 %v3292_v12 }
0x17c2   :  { %1985 = vmatpush1.bf16.msra.mxu0 %v3298_v15 }
0x17c3   :  { %1986 = vmatprep.subr.bf16.mxu0 %v3300_v48 }
0x17c6   :  { %1987 = vmatpush1.bf16.msra.mxu0 %v3308_v50 }
0x17c7   :  { %2350 = vmatprep.subr.bf16.mxu0 %v2805_v1 }
0x188c   :  { %v1858_v24 = vpop.f32.mrb[52].mxu0 }
0x188d   :  { %v1871_v14 = vadd.f32 %v3351_v9, %v1858_v24  ;;  %v1860_v55 = vpop.f32.mrb[53].mxu0 }
0x188e   :  { %v1872_v59 = vadd.f32 %v3355_v36, %v1860_v55  ;;  %v1862_v22 = vpop.f32.mrb[54].mxu0 }
0x188f   :  { %v2328_v37 = vmul.f32 -1.442695, %v1871_v14  ;;  %v1863_v39 = vpop.f32.mrb[55].mxu0 }
0x1890   :  { %v2329_v30 = vmul.f32 -1.442695, %v1872_v59 }
0x1891   :  { %2584 = vpow2.f32 %v2328_v37 }
0x1892   :  { %2586 = vtanh.f32 %v1872_v59 }
0x189b   :  { %v2585_v62 = vpop.eup %2584 }
0x189c   :  { %v1879_v11 = vadd.f32 1.0, %v2585_v62  ;;  %v2587_v17 = vpop.eup %2586 }
0x189e   :  { %2588 = vrcp.f32 %v1879_v11 }
0x189f   :  { %2590 = vpow2.f32 %v2329_v30 }
0x18a8   :  { %v2589_v27 = vpop.eup %2588 }
0x18a9   :  { %v1887_v32 = vmul.f32 %v2589_v27, %v2587_v17  ;;  %v2591_v10 = vpop.eup %2590  ;;  %v1886_v2 = vmul.f32 %v2589_v27, %v1814_v35 }
0x18aa   :  { %v1880_v9 = vadd.f32 1.0, %v2591_v10 }
0x18ab   :  { %1889 = vrot.lane.b32.xlu1 %v1887_v32, %s2806_s3 }
0x18ac   :  { %2592 = vrcp.f32 %v1880_v9 }
0x18b6   :  { %v2593_v21 = vpop.eup %2592 }
0x191d   :  { %v1890_v18 = vpop.permute.xlu1 %1889 }
0x191e   :  { %v1892_v36 = vadd.f32 %v1890_v18, %v1886_v2 }
0x1920   :  { %2594 = vtanh.f32 %v1892_v36 }
0x192a   :  { %v2595_v40 = vpop.eup %2594 }
0x192b   :  { %v1894_v3 = vmul.f32 %v2595_v40, %v2593_v21 }
0x192d   :  { %v1895_v4 = vpack.c.bf16 %v1894_v3, %v1894_v3 }
0x192f   :  { %1897 = vrot.lane.b32.xlu0 %v1895_v4, %s2806_s3  ;;  %v2438_v4 = vld [vmem:[%s3496_s9 + $0x10] sm:$0xff]  }
0x19a1   :  { %v1898_v13 = vpop.permute.xlu0 %1897 }
0x19a2   :  { %2330 = vmatmul.mubr.msk.bf16.vlgmr.msra.gmra.mrb[60].mxu1 %vm483_vm3, %v1898_v13 }
0x19a3   :  { %2059 = vmatpush1.bf16.msra.mxu1 %v3278_v42  ;;  %2090 = vmatprep.mubr.bf16.mxu1 %v2804_v0 }
0x19a4   :  { %2060 = vmatprep.subr.bf16.mxu1 %v3282_v31 }
0x19a7   :  { %2061 = vmatpush1.bf16.msra.mxu1 %v3288_v44 }
0x19a8   :  { %2062 = vmatprep.subr.bf16.mxu1 %v3292_v12 }
0x19ab   :  { %2063 = vmatpush1.bf16.msra.mxu1 %v3298_v15 }
0x19ac   :  { %2064 = vmatprep.subr.bf16.mxu1 %v3300_v48 }
0x19af   :  { %2065 = vmatpush1.bf16.msra.mxu1 %v3308_v50 }
0x1a75   :  { %v1936_v33 = vpop.f32.mrb[60].mxu1 }
0x1a76   :  { %v1949_v45 = vadd.f32 %v3357_v41, %v1936_v33  ;;  %v1938_v47 = vpop.f32.mrb[61].mxu1 }
0x1a77   :  { %v1950_v42 = vadd.f32 %v3359_v6, %v1938_v47  ;;  %v1940_v57 = vpop.f32.mrb[62].mxu1 }
0x1a78   :  { %v2331_v0 = vmul.f32 -1.442695, %v1949_v45  ;;  %v1941_v54 = vpop.f32.mrb[63].mxu1 }
0x1a79   :  { %v2332_v48 = vmul.f32 -1.442695, %v1950_v42 }
0x1a7a   :  { %2596 = vpow2.f32 %v2331_v0  ;;  %v2439_v0 = vld [vmem:[%s3496_s9 + $0x18] sm:$0xff]  }
0x1a7b   :  { %2598 = vtanh.f32 %v1950_v42 }
0x1a84   :  { %v2597_v31 = vpop.eup %2596 }
0x1a85   :  { %v1957_v44 = vadd.f32 1.0, %v2597_v31  ;;  %v2599_v12 = vpop.eup %2598 }
0x1a87   :  { %2600 = vrcp.f32 %v1957_v44 }
0x1a88   :  { %2602 = vpow2.f32 %v2332_v48 }
0x1a91   :  { %v2601_v15 = vpop.eup %2600 }
0x1a92   :  { %v1965_v58 = vmul.f32 %v2601_v15, %v2599_v12  ;;  %v2603_v50 = vpop.eup %2602  ;;  %v1964_v61 = vmul.f32 %v2601_v15, %v1892_v36 }
0x1a93   :  { %v1958_v41 = vadd.f32 1.0, %v2603_v50 }
0x1a94   :  { %1967 = vrot.lane.b32.xlu1 %v1965_v58, %s2806_s3 }
0x1a95   :  { %2604 = vrcp.f32 %v1958_v41 }
0x1a9f   :  { %v2605_v20 = vpop.eup %2604 }
0x1b06   :  { %v1968_v5 = vpop.permute.xlu1 %1967 }
0x1b07   :  { %v1970_v6 = vadd.f32 %v1968_v5, %v1964_v61  ;;  %v2339_v61 = vld [vmem:[%s3497_s10] ss:$0 sm:$0xff] }
0x1b09   :  { %2606 = vtanh.f32 %v1970_v6 }
0x1b13   :  { %v2607_v26 = vpop.eup %2606 }
0x1b14   :  { %v1972_v46 = vmul.f32 %v2607_v26, %v2605_v20 }
0x1b16   :  { %v1973_v51 = vpack.c.bf16 %v1972_v46, %v1972_v46 }
0x1b18   :  { %1975 = vrot.lane.b32.xlu0 %v1973_v51, %s2806_s3 }
0x1b8a   :  { %v1976_v19 = vpop.permute.xlu0 %1975 }
0x1b8b   :  { %2333 = vmatmul.mubr.msk.bf16.vlgmr.msra.gmra.mrb[56].mxu0 %vm483_vm3, %v1976_v19 }
0x1b8c   :  { %2358 = vmatprep.mubr.msk.bf16.mxu0 %vm2807_vm6, %v2805_v1 }
0x1c5e   :  { %v2014_v56 = vpop.f32.mrb[56].mxu0 }
0x1c5f   :  { %v2027_v38 = vadd.f32 %v3361_v49, %v2014_v56  ;;  %v2016_v43 = vpop.f32.mrb[57].mxu0 }
0x1c60   :  { %v2028_v29 = vadd.f32 %v3363_v52, %v2016_v43  ;;  %v2018_v53 = vpop.f32.mrb[58].mxu0 }
0x1c61   :  { %v2334_v7 = vmul.f32 -1.442695, %v2027_v38  ;;  %v2019_v35 = vpop.f32.mrb[59].mxu0 }
0x1c62   :  { %v2335_v24 = vmul.f32 -1.442695, %v2028_v29 }
0x1c63   :  { %2608 = vpow2.f32 %v2334_v7 }
0x1c64   :  { %2610 = vtanh.f32 %v2028_v29 }
0x1c6d   :  { %v2609_v34 = vpop.eup %2608 }
0x1c6e   :  { %v2035_v16 = vadd.f32 1.0, %v2609_v34  ;;  %v2611_v60 = vpop.eup %2610 }
0x1c70   :  { %2612 = vrcp.f32 %v2035_v16 }
0x1c71   :  { %2614 = vpow2.f32 %v2335_v24 }
0x1c7a   :  { %v2613_v28 = vpop.eup %2612 }
0x1c7b   :  { %v2043_v25 = vmul.f32 %v2613_v28, %v2611_v60  ;;  %v2615_v14 = vpop.eup %2614  ;;  %v2042_v55 = vmul.f32 %v2613_v28, %v1970_v6 }
0x1c7c   :  { %v2036_v49 = vadd.f32 1.0, %v2615_v14 }
0x1c7d   :  { %2045 = vrot.lane.b32.xlu1 %v2043_v25, %s2806_s3 }
0x1c7e   :  { %2616 = vrcp.f32 %v2036_v49 }
0x1c88   :  { %v2617_v22 = vpop.eup %2616 }
0x1cef   :  { %v2046_v59 = vpop.permute.xlu1 %2045 }
0x1cf0   :  { %v2048_v52 = vadd.f32 %v2046_v59, %v2042_v55 }
0x1cf2   :  { %2618 = vtanh.f32 %v2048_v52 }
0x1cfc   :  { %v2619_v37 = vpop.eup %2618 }
0x1cfd   :  { %v2050_v39 = vmul.f32 %v2619_v37, %v2617_v22 }
0x1cff   :  { %v2051_v62 = vpack.c.bf16 %v2050_v39, %v2050_v39 }
0x1d01   :  { %2053 = vrot.lane.b32.xlu0 %v2051_v62, %s2806_s3 }
0x1d73   :  { %v2054_v11 = vpop.permute.xlu0 %2053 }
0x1d74   :  { %2336 = vmatmul.mubr.msk.bf16.vlgmr.msra.gmra.mrb[64].mxu1 %vm483_vm3, %v2054_v11 }
0x1e47   :  { %v2092_v17 = vpop.f32.mrb[64].mxu1 }
0x1e48   :  { %v2105_v27 = vadd.f32 %v3366_v8, %v2092_v17  ;;  %v2094_v32 = vpop.f32.mrb[65].mxu1  ;;  %v2436_v8 = vld [vmem:[%s3496_s9] sm:$0xff]  }
0x1e49   :  { %v2106_v30 = vadd.f32 %v3368_v23, %v2094_v32  ;;  %v2096_v10 = vpop.f32.mrb[66].mxu1  ;;  %2351 = vmatpush3.bf16.msra.mxu0 %v2436_v8  ;;  %v2437_v23 = vld [vmem:[%s3496_s9 + $0x8] sm:$0xff]  }
0x1e4a   :  { %v2337_v9 = vmul.f32 -1.442695, %v2105_v27  ;;  %v2097_v2 = vpop.f32.mrb[67].mxu1  ;;  %2352 = vmatprep.subr.bf16.mxu0 %v2805_v1 }
0x1e4b   :  { %v2338_v13 = vmul.f32 -1.442695, %v2106_v30 }
0x1e4c   :  { %2620 = vpow2.f32 %v2337_v9 }
0x1e4d   :  { %2622 = vtanh.f32 %v2106_v30  ;;  %2353 = vmatpush3.bf16.msra.mxu0 %v2437_v23 }
0x1e4e   :  { %2354 = vmatprep.subr.bf16.mxu0 %v2805_v1 }
0x1e51   :  { %2355 = vmatpush3.bf16.msra.mxu0 %v2438_v4 }
0x1e52   :  { %2356 = vmatprep.subr.bf16.mxu0 %v2805_v1 }
0x1e55   :  { %2357 = vmatpush3.bf16.msra.mxu0 %v2439_v0 }
0x1e56   :  { %v2621_v18 = vpop.eup %2620 }
0x1e57   :  { %v2113_v36 = vadd.f32 1.0, %v2621_v18  ;;  %v2623_v21 = vpop.eup %2622 }
0x1e59   :  { %2624 = vrcp.f32 %v2113_v36 }
0x1e5a   :  { %2626 = vpow2.f32 %v2338_v13 }
0x1e63   :  { %v2625_v40 = vpop.eup %2624 }
0x1e64   :  { %v2121_v3 = vmul.f32 %v2625_v40, %v2623_v21  ;;  %v2627_v33 = vpop.eup %2626  ;;  %v2120_v47 = vmul.f32 %v2625_v40, %v2048_v52 }
0x1e65   :  { %v2114_v45 = vadd.f32 1.0, %v2627_v33 }
0x1e66   :  { %2123 = vrot.lane.b32.xlu1 %v2121_v3, %s2806_s3 }
0x1e67   :  { %2628 = vrcp.f32 %v2114_v45 }
0x1e71   :  { %v2629_v54 = vpop.eup %2628 }
0x1ed8   :  { %v2124_v42 = vpop.permute.xlu1 %2123 }
0x1ed9   :  { %v2126_v57 = vadd.f32 %v2124_v42, %v2120_v47 }
0x1edb   :  { %2630 = vtanh.f32 %v2126_v57 }
0x1ee5   :  { %v2631_v31 = vpop.eup %2630 }
0x1ee6   :  { %v2128_v44 = vmul.f32 %v2631_v31, %v2629_v54 }
0x1ee8   :  { %v2377_v12 = vpack.i.bf16 %v3371_v63, %v2128_v44 }
0x1eea   :  { %2378 = vrot.lane.b32.xlu0 %v2377_v12, %s2806_s3 }
0x1f5c   :  { %v2379_v15 = vpop.permute.xlu0 %2378 }
0x1f5d   :  { %v2381_v58 = vunpack.i.h.bf16 %v2379_v15  ;;  %v2380_v48 = vunpack.i.l.bf16 %v2379_v15 }
0x1f5f   :  { %v2137_v50 = vsel %vm562_vm4, %v2380_v48, %v2381_v58 }
0x1f60   :  { %v2138_v41 = vpack.c.bf16 %v2137_v50, %v2137_v50 }
0x1f62   :  { %2359 = vmatmul.mubr.msk.bf16.vlgmr.msra.gmra.mrb[60].mxu0 %vm483_vm3, %v2138_v41 }
0x2035   :  { %v2215_v1 = vpop.f32.mrb[60].mxu0 }
0x2036   :  { %v2216_v5 = vadd.f32 %v2339_v61, %v2215_v1  ;;  %v2360_v63 = vpop.f32.mrb[61].mxu0 }
0x2037   :  { %v2218_v6 = vpop.f32.mrb[62].mxu0 }
0x2038   :  { %v2361_v20 = vpop.f32.mrb[63].mxu0  ;;  %2222 = vst.msk [vmem:[#allocation17] sm:$0x3] %vm2221_vm7, %v2216_v5 }
0x2039   :  { %2775 = shalt.err (!%p2772_p10)
}
0x203a   :  { %s2776_s10 = scalar_lea.hbm %s3498_s11, 32 }
0x203b   :  { %p2777_p11 = scmp.ne.s32.totalorder %s3498_s11, %s2776_s10  ;;  %p2780_p12 = scmp.lt.u32.totalorder %s2776_s10, %s3498_s11 }
0x203d   :  { %p2782_p13 = pnand %p2780_p12, %p2777_p11 }
0x203f   :  { %2785 = shalt.err (!%p2782_p13)
}
0x2040   :  { %2232 = dma.vmem_to_hbm [thread:$0]  %s2230_s14, 32, %s3498_s11, [#allocation8]  }
0x2041   :  { %2794 = dma.done.wait [#allocation8], 32  }
0x2042   :  { %2795 = vsyncadd [#allocation8], 4294967264 }
0x2043   :  { %2236 = vsyncpa [#allocation7], 1 }
0x2044   :  { %2237 = vsyncpa [#allocation10], 1 }
0x2045   :  { %2238 = vsyncpa [#allocation13], 1 }
0x2046   :  { %2239 = vsyncpa [#allocation16], 1 }
0x2047   :  { %2240 = vsyncpa [#allocation8], 1 }

</bundles_post_ra>
